<compile_context>
chip_gen: v7x
topology: tpu7x:2x2x1
jax: 0.10.0
libtpu: 0.0.40
codegen_flags: <defaults>
</compile_context>

<pallas_src>
import jax
import jax.numpy as jnp
from jax.experimental import pallas as pl
from jax.experimental.pallas import tpu as pltpu

HIDDEN = 128   # hidden_size (module default 100, padded to a full 128-lane width)
VOCAB = 64     # input_size (vocabulary)
SEQ_LEN = 8    # number of encoder steps processed per pallas_call


def encoder_gru_kernel(tok_ref,    # scalar prefetch: (T,) int32 token ids (SMEM)
                       emb_ref,    # (VOCAB, H) embedding table, VMEM-resident
                       h0_ref,     # (1, H)     initial hidden state
                       wih_ref,    # (H, 3H)    fused input->gate weights (x @ W), order r|z|n
                       whh_ref,    # (H, 3H)    fused hidden->gate weights (h @ W)
                       bgi_ref,    # (1, 3H)    b_ih with b_hh pre-added on the r/z lanes
                       bhn_ref,    # (1, H)     b_hh for the n lane only
                       out_ref):   # (T, H)     all per-step GRU outputs (dense store)
    H = h0_ref.shape[1]
    T = out_ref.shape[0]

    # Gather the T embedding rows from the resident table into one (T, H) tile.
    x_rows = [emb_ref[pl.ds(tok_ref[t], 1), :] for t in range(T)]
    x = jnp.concatenate(x_rows, axis=0)                                   # (T, H)

    # Hoisted input-side projection for the whole sequence: one MXU matmul, M = T.
    gi_all = (jnp.dot(x, wih_ref[...], preferred_element_type=jnp.float32)
              + bgi_ref[...])                                             # (T, 3H)

    bhn = bhn_ref[...]                                                    # (1, H)
    h = h0_ref[...]                                                       # (1, H)

    outs = []
    for t in range(T):   # statically unrolled recurrence (T is small & fixed)
        gh = jnp.dot(h, whh_ref[...], preferred_element_type=jnp.float32)  # (1, 3H)
        gi = gi_all[t:t + 1, :]                                             # (1, 3H)
        # PyTorch nn.GRU gate math (gate order r, z, n):
        r = jax.nn.sigmoid(gi[:, 0:H] + gh[:, 0:H])
        z = jax.nn.sigmoid(gi[:, H:2 * H] + gh[:, H:2 * H])
        n = jnp.tanh(gi[:, 2 * H:3 * H] + r * (gh[:, 2 * H:3 * H] + bhn))
        h = n + z * (h - n)            # == (1 - z) * n + z * h
        outs.append(h)

    out_ref[...] = jnp.concatenate(outs, axis=0)   # single dense (T, H) store


def init_params(key, vocab, hidden):
    ks = jax.random.split(key, 5)
    k = 1.0 / jnp.sqrt(jnp.float32(hidden))
    u = lambda kk, shape: jax.random.uniform(kk, shape, jnp.float32, -k, k)
    return {
        "embedding": jax.random.normal(ks[0], (vocab, hidden), jnp.float32),
        # Pre-transposed + gate-fused layouts: x @ w_ih -> [r | z | n]
        "w_ih": u(ks[1], (hidden, 3 * hidden)),
        "w_hh": u(ks[2], (hidden, 3 * hidden)),
        "b_ih": u(ks[3], (1, 3 * hidden)),
        "b_hh": u(ks[4], (1, 3 * hidden)),
    }


def encoder_gru_forward(tokens, hidden, params):
    """tokens: (T,) int32 token ids; hidden: (1, 1, HIDDEN) float32.

    Runs the PyTorch forward once per token inside a single pallas_call with a
    single grid step.  Returns (outputs (T, 1, HIDDEN), hidden (1, 1, HIDDEN)).
    """
    H = HIDDEN
    tokens = jnp.asarray(tokens, jnp.int32).reshape(-1)
    T = int(tokens.shape[0])
    h0 = hidden.reshape(1, H).astype(jnp.float32)

    # Pre-fuse biases: b_ih + b_hh for the r/z lanes; keep b_hh[n] separate
    # (it must be added inside r * (...) per PyTorch semantics).
    b_ih = params["b_ih"].astype(jnp.float32)
    b_hh = params["b_hh"].astype(jnp.float32)
    b_gi = b_ih.at[:, 0:2 * H].add(b_hh[:, 0:2 * H])        # (1, 3H)
    b_hn = b_hh[:, 2 * H:3 * H]                             # (1, H)

    grid_spec = pltpu.PrefetchScalarGridSpec(
        num_scalar_prefetch=1,       # token ids -> SMEM
        grid=(1,),                   # single grid step: loop lives inside the kernel
        in_specs=[
            pl.BlockSpec((VOCAB, H), lambda i, tok: (0, 0)),        # embedding (resident)
            pl.BlockSpec((1, H), lambda i, tok: (0, 0)),            # h0
            pl.BlockSpec((H, 3 * H), lambda i, tok: (0, 0)),        # w_ih
            pl.BlockSpec((H, 3 * H), lambda i, tok: (0, 0)),        # w_hh
            pl.BlockSpec((1, 3 * H), lambda i, tok: (0, 0)),        # fused gi bias
            pl.BlockSpec((1, H), lambda i, tok: (0, 0)),            # b_hh (n lanes)
        ],
        out_specs=pl.BlockSpec((T, H), lambda i, tok: (0, 0)),      # dense (T, H) slab
    )

    outputs2d = pl.pallas_call(
        encoder_gru_kernel,
        out_shape=jax.ShapeDtypeStruct((T, H), jnp.float32),
        grid_spec=grid_spec,
        compiler_params=pltpu.CompilerParams(
            dimension_semantics=("arbitrary",)),
    )(tokens, params["embedding"], h0, params["w_ih"], params["w_hh"], b_gi, b_hn)

    outputs = outputs2d.reshape(T, 1, H)
    hidden_out = outputs2d[-1].reshape(1, 1, H)
    return outputs, hidden_out


def encoder_gru_reference(tokens, hidden, p):
    """Pure-JAX reference: PyTorch forward applied once per token."""
    H = HIDDEN
    hp = jax.lax.Precision.HIGHEST
    h = hidden.reshape(1, H)
    outs = []
    for t in range(tokens.shape[0]):
        x = p["embedding"][tokens[t]].reshape(1, H)
        gi = jnp.dot(x, p["w_ih"], precision=hp) + p["b_ih"]
        gh = jnp.dot(h, p["w_hh"], precision=hp) + p["b_hh"]
        r = jax.nn.sigmoid(gi[:, 0:H] + gh[:, 0:H])
        z = jax.nn.sigmoid(gi[:, H:2 * H] + gh[:, H:2 * H])
        n = jnp.tanh(gi[:, 2 * H:3 * H] + r * gh[:, 2 * H:3 * H])
        h = (1.0 - z) * n + z * h
        outs.append(h)
    outputs = jnp.stack(outs, axis=0)          # (T, 1, H)
    return outputs, h.reshape(1, 1, H)


if __name__ == "__main__":
    key = jax.random.PRNGKey(0)
    pkey, tkey = jax.random.split(key, 2)

    params = init_params(pkey, VOCAB, HIDDEN)
    tokens = jax.random.randint(tkey, (SEQ_LEN,), 0, VOCAB, dtype=jnp.int32)
    hidden = jnp.zeros((1, 1, HIDDEN), jnp.float32)   # module's init_hidden()

    outputs, h_final = encoder_gru_forward(tokens, hidden, params)
    outputs = jax.block_until_ready(outputs)
    h_final = jax.block_until_ready(h_final)

    ref_out, ref_h = encoder_gru_reference(tokens, hidden, params)
    assert outputs.shape == (SEQ_LEN, 1, HIDDEN)
    assert h_final.shape == (1, 1, HIDDEN)
    assert jnp.allclose(outputs, ref_out, atol=1e-4, rtol=1e-4)
    assert jnp.allclose(h_final, ref_h, atol=1e-4, rtol=1e-4)

    print("KERNEL_OK")
</pallas_src>

<mosaic_0001>
module attributes {stable_mosaic.version = 11 : i64} {
  func.func @encoder_gru_kernel(%arg0: i32, %arg1: memref<8xi32, #tpu.memory_space<smem>>, %arg2: memref<64x128xf32, #tpu.memory_space<vmem>>, %arg3: memref<1x128xf32, #tpu.memory_space<vmem>>, %arg4: memref<128x384xf32, #tpu.memory_space<vmem>>, %arg5: memref<128x384xf32, #tpu.memory_space<vmem>>, %arg6: memref<1x384xf32, #tpu.memory_space<vmem>>, %arg7: memref<1x128xf32, #tpu.memory_space<vmem>>, %arg8: memref<8x128xf32, #tpu.memory_space<vmem>>) attributes {dimension_semantics = [#tpu.dimension_semantics<arbitrary>], iteration_bounds = array<i64: 1>, scalar_prefetch = 1 : i64, scratch_operands = 0 : i64, tpu.core_type = #tpu.core_type<tc>, window_params = [{pipeline_mode = #tpu.pipeline_mode<synchronous>, transform_indices = @transform_0, window_bounds = array<i64: 64, 128>}, {pipeline_mode = #tpu.pipeline_mode<synchronous>, transform_indices = @transform_1, window_bounds = array<i64: 1, 128>}, {pipeline_mode = #tpu.pipeline_mode<synchronous>, transform_indices = @transform_2, window_bounds = array<i64: 128, 384>}, {pipeline_mode = #tpu.pipeline_mode<synchronous>, transform_indices = @transform_3, window_bounds = array<i64: 128, 384>}, {pipeline_mode = #tpu.pipeline_mode<synchronous>, transform_indices = @transform_4, window_bounds = array<i64: 1, 384>}, {pipeline_mode = #tpu.pipeline_mode<synchronous>, transform_indices = @transform_5, window_bounds = array<i64: 1, 128>}, {pipeline_mode = #tpu.pipeline_mode<synchronous>, transform_indices = @transform_6, window_bounds = array<i64: 8, 128>}]} {
    %c0 = arith.constant 0 : index
    %0 = memref.load %arg1[%c0] : memref<8xi32, #tpu.memory_space<smem>>
    %1 = arith.index_cast %0 : i32 to index
    %c0_0 = arith.constant 0 : index
    %2 = vector.load %arg2[%1, %c0_0] : memref<64x128xf32, #tpu.memory_space<vmem>>, vector<1x128xf32>
    %c1 = arith.constant 1 : index
    %3 = memref.load %arg1[%c1] : memref<8xi32, #tpu.memory_space<smem>>
    %4 = arith.index_cast %3 : i32 to index
    %c0_1 = arith.constant 0 : index
    %5 = vector.load %arg2[%4, %c0_1] : memref<64x128xf32, #tpu.memory_space<vmem>>, vector<1x128xf32>
    %c2 = arith.constant 2 : index
    %6 = memref.load %arg1[%c2] : memref<8xi32, #tpu.memory_space<smem>>
    %7 = arith.index_cast %6 : i32 to index
    %c0_2 = arith.constant 0 : index
    %8 = vector.load %arg2[%7, %c0_2] : memref<64x128xf32, #tpu.memory_space<vmem>>, vector<1x128xf32>
    %c3 = arith.constant 3 : index
    %9 = memref.load %arg1[%c3] : memref<8xi32, #tpu.memory_space<smem>>
    %10 = arith.index_cast %9 : i32 to index
    %c0_3 = arith.constant 0 : index
    %11 = vector.load %arg2[%10, %c0_3] : memref<64x128xf32, #tpu.memory_space<vmem>>, vector<1x128xf32>
    %c4 = arith.constant 4 : index
    %12 = memref.load %arg1[%c4] : memref<8xi32, #tpu.memory_space<smem>>
    %13 = arith.index_cast %12 : i32 to index
    %c0_4 = arith.constant 0 : index
    %14 = vector.load %arg2[%13, %c0_4] : memref<64x128xf32, #tpu.memory_space<vmem>>, vector<1x128xf32>
    %c5 = arith.constant 5 : index
    %15 = memref.load %arg1[%c5] : memref<8xi32, #tpu.memory_space<smem>>
    %16 = arith.index_cast %15 : i32 to index
    %c0_5 = arith.constant 0 : index
    %17 = vector.load %arg2[%16, %c0_5] : memref<64x128xf32, #tpu.memory_space<vmem>>, vector<1x128xf32>
    %c6 = arith.constant 6 : index
    %18 = memref.load %arg1[%c6] : memref<8xi32, #tpu.memory_space<smem>>
    %19 = arith.index_cast %18 : i32 to index
    %c0_6 = arith.constant 0 : index
    %20 = vector.load %arg2[%19, %c0_6] : memref<64x128xf32, #tpu.memory_space<vmem>>, vector<1x128xf32>
    %c7 = arith.constant 7 : index
    %21 = memref.load %arg1[%c7] : memref<8xi32, #tpu.memory_space<smem>>
    %22 = arith.index_cast %21 : i32 to index
    %c0_7 = arith.constant 0 : index
    %23 = vector.load %arg2[%22, %c0_7] : memref<64x128xf32, #tpu.memory_space<vmem>>, vector<1x128xf32>
    %24 = tpu.concatenate %2, %5, %8, %11, %14, %17, %20, %23 in 0 : vector<1x128xf32>, vector<1x128xf32>, vector<1x128xf32>, vector<1x128xf32>, vector<1x128xf32>, vector<1x128xf32>, vector<1x128xf32>, vector<1x128xf32> -> vector<8x128xf32>
    %c0_8 = arith.constant 0 : index
    %c0_9 = arith.constant 0 : index
    %25 = vector.load %arg4[%c0_8, %c0_9] : memref<128x384xf32, #tpu.memory_space<vmem>>, vector<128x384xf32>
    %cst = arith.constant dense<0.000000e+00> : vector<8x384xf32>
    %26 = tpu.matmul %24, %25, %cst {dimension_numbers = #tpu.dot_dimension_numbers<[1], [0], [0], [1], [0, 0, 1, 1], [], []>} : vector<8x128xf32>, vector<128x384xf32>, vector<8x384xf32> -> vector<8x384xf32>
    %c0_10 = arith.constant 0 : index
    %c0_11 = arith.constant 0 : index
    %27 = vector.load %arg6[%c0_10, %c0_11] : memref<1x384xf32, #tpu.memory_space<vmem>>, vector<1x384xf32>
    %28 = vector.broadcast %27 : vector<1x384xf32> to vector<8x384xf32>
    %29 = arith.addf %26, %28 : vector<8x384xf32>
    %c0_12 = arith.constant 0 : index
    %c0_13 = arith.constant 0 : index
    %30 = vector.load %arg7[%c0_12, %c0_13] : memref<1x128xf32, #tpu.memory_space<vmem>>, vector<1x128xf32>
    %c0_14 = arith.constant 0 : index
    %c0_15 = arith.constant 0 : index
    %31 = vector.load %arg3[%c0_14, %c0_15] : memref<1x128xf32, #tpu.memory_space<vmem>>, vector<1x128xf32>
    %c0_16 = arith.constant 0 : index
    %c0_17 = arith.constant 0 : index
    %32 = vector.load %arg5[%c0_16, %c0_17] : memref<128x384xf32, #tpu.memory_space<vmem>>, vector<128x384xf32>
    %cst_18 = arith.constant dense<0.000000e+00> : vector<1x384xf32>
    %33 = tpu.matmul %31, %32, %cst_18 {dimension_numbers = #tpu.dot_dimension_numbers<[1], [0], [0], [1], [0, 0, 1, 1], [], []>} : vector<1x128xf32>, vector<128x384xf32>, vector<1x384xf32> -> vector<1x384xf32>
    %34 = vector.extract_strided_slice %29 {offsets = [0, 0], sizes = [1, 384], strides = [1, 1]} : vector<8x384xf32> to vector<1x384xf32>
    %35 = vector.extract_strided_slice %34 {offsets = [0, 0], sizes = [1, 128], strides = [1, 1]} : vector<1x384xf32> to vector<1x128xf32>
    %36 = vector.extract_strided_slice %33 {offsets = [0, 0], sizes = [1, 128], strides = [1, 1]} : vector<1x384xf32> to vector<1x128xf32>
    %37 = arith.addf %35, %36 : vector<1x128xf32>
    %38 = arith.negf %37 : vector<1x128xf32>
    %39 = math.exp %38 : vector<1x128xf32>
    %cst_19 = arith.constant 1.000000e+00 : f32
    %40 = vector.broadcast %cst_19 : f32 to vector<1x128xf32>
    %41 = arith.addf %40, %39 : vector<1x128xf32>
    %42 = arith.divf %40, %41 : vector<1x128xf32>
    %43 = vector.extract_strided_slice %34 {offsets = [0, 128], sizes = [1, 128], strides = [1, 1]} : vector<1x384xf32> to vector<1x128xf32>
    %44 = vector.extract_strided_slice %33 {offsets = [0, 128], sizes = [1, 128], strides = [1, 1]} : vector<1x384xf32> to vector<1x128xf32>
    %45 = arith.addf %43, %44 : vector<1x128xf32>
    %46 = arith.negf %45 : vector<1x128xf32>
    %47 = math.exp %46 : vector<1x128xf32>
    %cst_20 = arith.constant 1.000000e+00 : f32
    %48 = vector.broadcast %cst_20 : f32 to vector<1x128xf32>
    %49 = arith.addf %48, %47 : vector<1x128xf32>
    %50 = arith.divf %48, %49 : vector<1x128xf32>
    %51 = vector.extract_strided_slice %34 {offsets = [0, 256], sizes = [1, 128], strides = [1, 1]} : vector<1x384xf32> to vector<1x128xf32>
    %52 = vector.extract_strided_slice %33 {offsets = [0, 256], sizes = [1, 128], strides = [1, 1]} : vector<1x384xf32> to vector<1x128xf32>
    %53 = arith.addf %52, %30 : vector<1x128xf32>
    %54 = arith.mulf %42, %53 : vector<1x128xf32>
    %55 = arith.addf %51, %54 : vector<1x128xf32>
    %56 = math.tanh %55 : vector<1x128xf32>
    %57 = arith.subf %31, %56 : vector<1x128xf32>
    %58 = arith.mulf %50, %57 : vector<1x128xf32>
    %59 = arith.addf %56, %58 : vector<1x128xf32>
    %c0_21 = arith.constant 0 : index
    %c0_22 = arith.constant 0 : index
    %60 = vector.load %arg5[%c0_21, %c0_22] : memref<128x384xf32, #tpu.memory_space<vmem>>, vector<128x384xf32>
    %cst_23 = arith.constant dense<0.000000e+00> : vector<1x384xf32>
    %61 = tpu.matmul %59, %60, %cst_23 {dimension_numbers = #tpu.dot_dimension_numbers<[1], [0], [0], [1], [0, 0, 1, 1], [], []>} : vector<1x128xf32>, vector<128x384xf32>, vector<1x384xf32> -> vector<1x384xf32>
    %62 = vector.extract_strided_slice %29 {offsets = [1, 0], sizes = [1, 384], strides = [1, 1]} : vector<8x384xf32> to vector<1x384xf32>
    %63 = vector.extract_strided_slice %62 {offsets = [0, 0], sizes = [1, 128], strides = [1, 1]} : vector<1x384xf32> to vector<1x128xf32>
    %64 = vector.extract_strided_slice %61 {offsets = [0, 0], sizes = [1, 128], strides = [1, 1]} : vector<1x384xf32> to vector<1x128xf32>
    %65 = arith.addf %63, %64 : vector<1x128xf32>
    %66 = arith.negf %65 : vector<1x128xf32>
    %67 = math.exp %66 : vector<1x128xf32>
    %cst_24 = arith.constant 1.000000e+00 : f32
    %68 = vector.broadcast %cst_24 : f32 to vector<1x128xf32>
    %69 = arith.addf %68, %67 : vector<1x128xf32>
    %70 = arith.divf %68, %69 : vector<1x128xf32>
    %71 = vector.extract_strided_slice %62 {offsets = [0, 128], sizes = [1, 128], strides = [1, 1]} : vector<1x384xf32> to vector<1x128xf32>
    %72 = vector.extract_strided_slice %61 {offsets = [0, 128], sizes = [1, 128], strides = [1, 1]} : vector<1x384xf32> to vector<1x128xf32>
    %73 = arith.addf %71, %72 : vector<1x128xf32>
    %74 = arith.negf %73 : vector<1x128xf32>
    %75 = math.exp %74 : vector<1x128xf32>
    %cst_25 = arith.constant 1.000000e+00 : f32
    %76 = vector.broadcast %cst_25 : f32 to vector<1x128xf32>
    %77 = arith.addf %76, %75 : vector<1x128xf32>
    %78 = arith.divf %76, %77 : vector<1x128xf32>
    %79 = vector.extract_strided_slice %62 {offsets = [0, 256], sizes = [1, 128], strides = [1, 1]} : vector<1x384xf32> to vector<1x128xf32>
    %80 = vector.extract_strided_slice %61 {offsets = [0, 256], sizes = [1, 128], strides = [1, 1]} : vector<1x384xf32> to vector<1x128xf32>
    %81 = arith.addf %80, %30 : vector<1x128xf32>
    %82 = arith.mulf %70, %81 : vector<1x128xf32>
    %83 = arith.addf %79, %82 : vector<1x128xf32>
    %84 = math.tanh %83 : vector<1x128xf32>
    %85 = arith.subf %59, %84 : vector<1x128xf32>
    %86 = arith.mulf %78, %85 : vector<1x128xf32>
    %87 = arith.addf %84, %86 : vector<1x128xf32>
    %c0_26 = arith.constant 0 : index
    %c0_27 = arith.constant 0 : index
    %88 = vector.load %arg5[%c0_26, %c0_27] : memref<128x384xf32, #tpu.memory_space<vmem>>, vector<128x384xf32>
    %cst_28 = arith.constant dense<0.000000e+00> : vector<1x384xf32>
    %89 = tpu.matmul %87, %88, %cst_28 {dimension_numbers = #tpu.dot_dimension_numbers<[1], [0], [0], [1], [0, 0, 1, 1], [], []>} : vector<1x128xf32>, vector<128x384xf32>, vector<1x384xf32> -> vector<1x384xf32>
    %90 = vector.extract_strided_slice %29 {offsets = [2, 0], sizes = [1, 384], strides = [1, 1]} : vector<8x384xf32> to vector<1x384xf32>
    %91 = vector.extract_strided_slice %90 {offsets = [0, 0], sizes = [1, 128], strides = [1, 1]} : vector<1x384xf32> to vector<1x128xf32>
    %92 = vector.extract_strided_slice %89 {offsets = [0, 0], sizes = [1, 128], strides = [1, 1]} : vector<1x384xf32> to vector<1x128xf32>
    %93 = arith.addf %91, %92 : vector<1x128xf32>
    %94 = arith.negf %93 : vector<1x128xf32>
    %95 = math.exp %94 : vector<1x128xf32>
    %cst_29 = arith.constant 1.000000e+00 : f32
    %96 = vector.broadcast %cst_29 : f32 to vector<1x128xf32>
    %97 = arith.addf %96, %95 : vector<1x128xf32>
    %98 = arith.divf %96, %97 : vector<1x128xf32>
    %99 = vector.extract_strided_slice %90 {offsets = [0, 128], sizes = [1, 128], strides = [1, 1]} : vector<1x384xf32> to vector<1x128xf32>
    %100 = vector.extract_strided_slice %89 {offsets = [0, 128], sizes = [1, 128], strides = [1, 1]} : vector<1x384xf32> to vector<1x128xf32>
    %101 = arith.addf %99, %100 : vector<1x128xf32>
    %102 = arith.negf %101 : vector<1x128xf32>
    %103 = math.exp %102 : vector<1x128xf32>
    %cst_30 = arith.constant 1.000000e+00 : f32
    %104 = vector.broadcast %cst_30 : f32 to vector<1x128xf32>
    %105 = arith.addf %104, %103 : vector<1x128xf32>
    %106 = arith.divf %104, %105 : vector<1x128xf32>
    %107 = vector.extract_strided_slice %90 {offsets = [0, 256], sizes = [1, 128], strides = [1, 1]} : vector<1x384xf32> to vector<1x128xf32>
    %108 = vector.extract_strided_slice %89 {offsets = [0, 256], sizes = [1, 128], strides = [1, 1]} : vector<1x384xf32> to vector<1x128xf32>
    %109 = arith.addf %108, %30 : vector<1x128xf32>
    %110 = arith.mulf %98, %109 : vector<1x128xf32>
    %111 = arith.addf %107, %110 : vector<1x128xf32>
    %112 = math.tanh %111 : vector<1x128xf32>
    %113 = arith.subf %87, %112 : vector<1x128xf32>
    %114 = arith.mulf %106, %113 : vector<1x128xf32>
    %115 = arith.addf %112, %114 : vector<1x128xf32>
    %c0_31 = arith.constant 0 : index
    %c0_32 = arith.constant 0 : index
    %116 = vector.load %arg5[%c0_31, %c0_32] : memref<128x384xf32, #tpu.memory_space<vmem>>, vector<128x384xf32>
    %cst_33 = arith.constant dense<0.000000e+00> : vector<1x384xf32>
    %117 = tpu.matmul %115, %116, %cst_33 {dimension_numbers = #tpu.dot_dimension_numbers<[1], [0], [0], [1], [0, 0, 1, 1], [], []>} : vector<1x128xf32>, vector<128x384xf32>, vector<1x384xf32> -> vector<1x384xf32>
    %118 = vector.extract_strided_slice %29 {offsets = [3, 0], sizes = [1, 384], strides = [1, 1]} : vector<8x384xf32> to vector<1x384xf32>
    %119 = vector.extract_strided_slice %118 {offsets = [0, 0], sizes = [1, 128], strides = [1, 1]} : vector<1x384xf32> to vector<1x128xf32>
    %120 = vector.extract_strided_slice %117 {offsets = [0, 0], sizes = [1, 128], strides = [1, 1]} : vector<1x384xf32> to vector<1x128xf32>
    %121 = arith.addf %119, %120 : vector<1x128xf32>
    %122 = arith.negf %121 : vector<1x128xf32>
    %123 = math.exp %122 : vector<1x128xf32>
    %cst_34 = arith.constant 1.000000e+00 : f32
    %124 = vector.broadcast %cst_34 : f32 to vector<1x128xf32>
    %125 = arith.addf %124, %123 : vector<1x128xf32>
    %126 = arith.divf %124, %125 : vector<1x128xf32>
    %127 = vector.extract_strided_slice %118 {offsets = [0, 128], sizes = [1, 128], strides = [1, 1]} : vector<1x384xf32> to vector<1x128xf32>
    %128 = vector.extract_strided_slice %117 {offsets = [0, 128], sizes = [1, 128], strides = [1, 1]} : vector<1x384xf32> to vector<1x128xf32>
    %129 = arith.addf %127, %128 : vector<1x128xf32>
    %130 = arith.negf %129 : vector<1x128xf32>
    %131 = math.exp %130 : vector<1x128xf32>
    %cst_35 = arith.constant 1.000000e+00 : f32
    %132 = vector.broadcast %cst_35 : f32 to vector<1x128xf32>
    %133 = arith.addf %132, %131 : vector<1x128xf32>
    %134 = arith.divf %132, %133 : vector<1x128xf32>
    %135 = vector.extract_strided_slice %118 {offsets = [0, 256], sizes = [1, 128], strides = [1, 1]} : vector<1x384xf32> to vector<1x128xf32>
    %136 = vector.extract_strided_slice %117 {offsets = [0, 256], sizes = [1, 128], strides = [1, 1]} : vector<1x384xf32> to vector<1x128xf32>
    %137 = arith.addf %136, %30 : vector<1x128xf32>
    %138 = arith.mulf %126, %137 : vector<1x128xf32>
    %139 = arith.addf %135, %138 : vector<1x128xf32>
    %140 = math.tanh %139 : vector<1x128xf32>
    %141 = arith.subf %115, %140 : vector<1x128xf32>
    %142 = arith.mulf %134, %141 : vector<1x128xf32>
    %143 = arith.addf %140, %142 : vector<1x128xf32>
    %c0_36 = arith.constant 0 : index
    %c0_37 = arith.constant 0 : index
    %144 = vector.load %arg5[%c0_36, %c0_37] : memref<128x384xf32, #tpu.memory_space<vmem>>, vector<128x384xf32>
    %cst_38 = arith.constant dense<0.000000e+00> : vector<1x384xf32>
    %145 = tpu.matmul %143, %144, %cst_38 {dimension_numbers = #tpu.dot_dimension_numbers<[1], [0], [0], [1], [0, 0, 1, 1], [], []>} : vector<1x128xf32>, vector<128x384xf32>, vector<1x384xf32> -> vector<1x384xf32>
    %146 = vector.extract_strided_slice %29 {offsets = [4, 0], sizes = [1, 384], strides = [1, 1]} : vector<8x384xf32> to vector<1x384xf32>
    %147 = vector.extract_strided_slice %146 {offsets = [0, 0], sizes = [1, 128], strides = [1, 1]} : vector<1x384xf32> to vector<1x128xf32>
    %148 = vector.extract_strided_slice %145 {offsets = [0, 0], sizes = [1, 128], strides = [1, 1]} : vector<1x384xf32> to vector<1x128xf32>
    %149 = arith.addf %147, %148 : vector<1x128xf32>
    %150 = arith.negf %149 : vector<1x128xf32>
    %151 = math.exp %150 : vector<1x128xf32>
    %cst_39 = arith.constant 1.000000e+00 : f32
    %152 = vector.broadcast %cst_39 : f32 to vector<1x128xf32>
    %153 = arith.addf %152, %151 : vector<1x128xf32>
    %154 = arith.divf %152, %153 : vector<1x128xf32>
    %155 = vector.extract_strided_slice %146 {offsets = [0, 128], sizes = [1, 128], strides = [1, 1]} : vector<1x384xf32> to vector<1x128xf32>
    %156 = vector.extract_strided_slice %145 {offsets = [0, 128], sizes = [1, 128], strides = [1, 1]} : vector<1x384xf32> to vector<1x128xf32>
    %157 = arith.addf %155, %156 : vector<1x128xf32>
    %158 = arith.negf %157 : vector<1x128xf32>
    %159 = math.exp %158 : vector<1x128xf32>
    %cst_40 = arith.constant 1.000000e+00 : f32
    %160 = vector.broadcast %cst_40 : f32 to vector<1x128xf32>
    %161 = arith.addf %160, %159 : vector<1x128xf32>
    %162 = arith.divf %160, %161 : vector<1x128xf32>
    %163 = vector.extract_strided_slice %146 {offsets = [0, 256], sizes = [1, 128], strides = [1, 1]} : vector<1x384xf32> to vector<1x128xf32>
    %164 = vector.extract_strided_slice %145 {offsets = [0, 256], sizes = [1, 128], strides = [1, 1]} : vector<1x384xf32> to vector<1x128xf32>
    %165 = arith.addf %164, %30 : vector<1x128xf32>
    %166 = arith.mulf %154, %165 : vector<1x128xf32>
    %167 = arith.addf %163, %166 : vector<1x128xf32>
    %168 = math.tanh %167 : vector<1x128xf32>
    %169 = arith.subf %143, %168 : vector<1x128xf32>
    %170 = arith.mulf %162, %169 : vector<1x128xf32>
    %171 = arith.addf %168, %170 : vector<1x128xf32>
    %c0_41 = arith.constant 0 : index
    %c0_42 = arith.constant 0 : index
    %172 = vector.load %arg5[%c0_41, %c0_42] : memref<128x384xf32, #tpu.memory_space<vmem>>, vector<128x384xf32>
    %cst_43 = arith.constant dense<0.000000e+00> : vector<1x384xf32>
    %173 = tpu.matmul %171, %172, %cst_43 {dimension_numbers = #tpu.dot_dimension_numbers<[1], [0], [0], [1], [0, 0, 1, 1], [], []>} : vector<1x128xf32>, vector<128x384xf32>, vector<1x384xf32> -> vector<1x384xf32>
    %174 = vector.extract_strided_slice %29 {offsets = [5, 0], sizes = [1, 384], strides = [1, 1]} : vector<8x384xf32> to vector<1x384xf32>
    %175 = vector.extract_strided_slice %174 {offsets = [0, 0], sizes = [1, 128], strides = [1, 1]} : vector<1x384xf32> to vector<1x128xf32>
    %176 = vector.extract_strided_slice %173 {offsets = [0, 0], sizes = [1, 128], strides = [1, 1]} : vector<1x384xf32> to vector<1x128xf32>
    %177 = arith.addf %175, %176 : vector<1x128xf32>
    %178 = arith.negf %177 : vector<1x128xf32>
    %179 = math.exp %178 : vector<1x128xf32>
    %cst_44 = arith.constant 1.000000e+00 : f32
    %180 = vector.broadcast %cst_44 : f32 to vector<1x128xf32>
    %181 = arith.addf %180, %179 : vector<1x128xf32>
    %182 = arith.divf %180, %181 : vector<1x128xf32>
    %183 = vector.extract_strided_slice %174 {offsets = [0, 128], sizes = [1, 128], strides = [1, 1]} : vector<1x384xf32> to vector<1x128xf32>
    %184 = vector.extract_strided_slice %173 {offsets = [0, 128], sizes = [1, 128], strides = [1, 1]} : vector<1x384xf32> to vector<1x128xf32>
    %185 = arith.addf %183, %184 : vector<1x128xf32>
    %186 = arith.negf %185 : vector<1x128xf32>
    %187 = math.exp %186 : vector<1x128xf32>
    %cst_45 = arith.constant 1.000000e+00 : f32
    %188 = vector.broadcast %cst_45 : f32 to vector<1x128xf32>
    %189 = arith.addf %188, %187 : vector<1x128xf32>
    %190 = arith.divf %188, %189 : vector<1x128xf32>
    %191 = vector.extract_strided_slice %174 {offsets = [0, 256], sizes = [1, 128], strides = [1, 1]} : vector<1x384xf32> to vector<1x128xf32>
    %192 = vector.extract_strided_slice %173 {offsets = [0, 256], sizes = [1, 128], strides = [1, 1]} : vector<1x384xf32> to vector<1x128xf32>
    %193 = arith.addf %192, %30 : vector<1x128xf32>
    %194 = arith.mulf %182, %193 : vector<1x128xf32>
    %195 = arith.addf %191, %194 : vector<1x128xf32>
    %196 = math.tanh %195 : vector<1x128xf32>
    %197 = arith.subf %171, %196 : vector<1x128xf32>
    %198 = arith.mulf %190, %197 : vector<1x128xf32>
    %199 = arith.addf %196, %198 : vector<1x128xf32>
    %c0_46 = arith.constant 0 : index
    %c0_47 = arith.constant 0 : index
    %200 = vector.load %arg5[%c0_46, %c0_47] : memref<128x384xf32, #tpu.memory_space<vmem>>, vector<128x384xf32>
    %cst_48 = arith.constant dense<0.000000e+00> : vector<1x384xf32>
    %201 = tpu.matmul %199, %200, %cst_48 {dimension_numbers = #tpu.dot_dimension_numbers<[1], [0], [0], [1], [0, 0, 1, 1], [], []>} : vector<1x128xf32>, vector<128x384xf32>, vector<1x384xf32> -> vector<1x384xf32>
    %202 = vector.extract_strided_slice %29 {offsets = [6, 0], sizes = [1, 384], strides = [1, 1]} : vector<8x384xf32> to vector<1x384xf32>
    %203 = vector.extract_strided_slice %202 {offsets = [0, 0], sizes = [1, 128], strides = [1, 1]} : vector<1x384xf32> to vector<1x128xf32>
    %204 = vector.extract_strided_slice %201 {offsets = [0, 0], sizes = [1, 128], strides = [1, 1]} : vector<1x384xf32> to vector<1x128xf32>
    %205 = arith.addf %203, %204 : vector<1x128xf32>
    %206 = arith.negf %205 : vector<1x128xf32>
    %207 = math.exp %206 : vector<1x128xf32>
    %cst_49 = arith.constant 1.000000e+00 : f32
    %208 = vector.broadcast %cst_49 : f32 to vector<1x128xf32>
    %209 = arith.addf %208, %207 : vector<1x128xf32>
    %210 = arith.divf %208, %209 : vector<1x128xf32>
    %211 = vector.extract_strided_slice %202 {offsets = [0, 128], sizes = [1, 128], strides = [1, 1]} : vector<1x384xf32> to vector<1x128xf32>
    %212 = vector.extract_strided_slice %201 {offsets = [0, 128], sizes = [1, 128], strides = [1, 1]} : vector<1x384xf32> to vector<1x128xf32>
    %213 = arith.addf %211, %212 : vector<1x128xf32>
    %214 = arith.negf %213 : vector<1x128xf32>
    %215 = math.exp %214 : vector<1x128xf32>
    %cst_50 = arith.constant 1.000000e+00 : f32
    %216 = vector.broadcast %cst_50 : f32 to vector<1x128xf32>
    %217 = arith.addf %216, %215 : vector<1x128xf32>
    %218 = arith.divf %216, %217 : vector<1x128xf32>
    %219 = vector.extract_strided_slice %202 {offsets = [0, 256], sizes = [1, 128], strides = [1, 1]} : vector<1x384xf32> to vector<1x128xf32>
    %220 = vector.extract_strided_slice %201 {offsets = [0, 256], sizes = [1, 128], strides = [1, 1]} : vector<1x384xf32> to vector<1x128xf32>
    %221 = arith.addf %220, %30 : vector<1x128xf32>
    %222 = arith.mulf %210, %221 : vector<1x128xf32>
    %223 = arith.addf %219, %222 : vector<1x128xf32>
    %224 = math.tanh %223 : vector<1x128xf32>
    %225 = arith.subf %199, %224 : vector<1x128xf32>
    %226 = arith.mulf %218, %225 : vector<1x128xf32>
    %227 = arith.addf %224, %226 : vector<1x128xf32>
    %c0_51 = arith.constant 0 : index
    %c0_52 = arith.constant 0 : index
    %228 = vector.load %arg5[%c0_51, %c0_52] : memref<128x384xf32, #tpu.memory_space<vmem>>, vector<128x384xf32>
    %cst_53 = arith.constant dense<0.000000e+00> : vector<1x384xf32>
    %229 = tpu.matmul %227, %228, %cst_53 {dimension_numbers = #tpu.dot_dimension_numbers<[1], [0], [0], [1], [0, 0, 1, 1], [], []>} : vector<1x128xf32>, vector<128x384xf32>, vector<1x384xf32> -> vector<1x384xf32>
    %230 = vector.extract_strided_slice %29 {offsets = [7, 0], sizes = [1, 384], strides = [1, 1]} : vector<8x384xf32> to vector<1x384xf32>
    %231 = vector.extract_strided_slice %230 {offsets = [0, 0], sizes = [1, 128], strides = [1, 1]} : vector<1x384xf32> to vector<1x128xf32>
    %232 = vector.extract_strided_slice %229 {offsets = [0, 0], sizes = [1, 128], strides = [1, 1]} : vector<1x384xf32> to vector<1x128xf32>
    %233 = arith.addf %231, %232 : vector<1x128xf32>
    %234 = arith.negf %233 : vector<1x128xf32>
    %235 = math.exp %234 : vector<1x128xf32>
    %cst_54 = arith.constant 1.000000e+00 : f32
    %236 = vector.broadcast %cst_54 : f32 to vector<1x128xf32>
    %237 = arith.addf %236, %235 : vector<1x128xf32>
    %238 = arith.divf %236, %237 : vector<1x128xf32>
    %239 = vector.extract_strided_slice %230 {offsets = [0, 128], sizes = [1, 128], strides = [1, 1]} : vector<1x384xf32> to vector<1x128xf32>
    %240 = vector.extract_strided_slice %229 {offsets = [0, 128], sizes = [1, 128], strides = [1, 1]} : vector<1x384xf32> to vector<1x128xf32>
    %241 = arith.addf %239, %240 : vector<1x128xf32>
    %242 = arith.negf %241 : vector<1x128xf32>
    %243 = math.exp %242 : vector<1x128xf32>
    %cst_55 = arith.constant 1.000000e+00 : f32
    %244 = vector.broadcast %cst_55 : f32 to vector<1x128xf32>
    %245 = arith.addf %244, %243 : vector<1x128xf32>
    %246 = arith.divf %244, %245 : vector<1x128xf32>
    %247 = vector.extract_strided_slice %230 {offsets = [0, 256], sizes = [1, 128], strides = [1, 1]} : vector<1x384xf32> to vector<1x128xf32>
    %248 = vector.extract_strided_slice %229 {offsets = [0, 256], sizes = [1, 128], strides = [1, 1]} : vector<1x384xf32> to vector<1x128xf32>
    %249 = arith.addf %248, %30 : vector<1x128xf32>
    %250 = arith.mulf %238, %249 : vector<1x128xf32>
    %251 = arith.addf %247, %250 : vector<1x128xf32>
    %252 = math.tanh %251 : vector<1x128xf32>
    %253 = arith.subf %227, %252 : vector<1x128xf32>
    %254 = arith.mulf %246, %253 : vector<1x128xf32>
    %255 = arith.addf %252, %254 : vector<1x128xf32>
    %256 = tpu.concatenate %59, %87, %115, %143, %171, %199, %227, %255 in 0 : vector<1x128xf32>, vector<1x128xf32>, vector<1x128xf32>, vector<1x128xf32>, vector<1x128xf32>, vector<1x128xf32>, vector<1x128xf32>, vector<1x128xf32> -> vector<8x128xf32>
    %c0_56 = arith.constant 0 : index
    %c0_57 = arith.constant 0 : index
    %257 = vector.load %arg8[%c0_56, %c0_57] : memref<8x128xf32, #tpu.memory_space<vmem>>, vector<8x128xf32>
    tpu.vector_store %arg8[%c0_56, %c0_57], %256 {strides = array<i32>} : memref<8x128xf32, #tpu.memory_space<vmem>>, vector<8x128xf32>,
    return
  }
  func.func @transform_0(%arg0: i32, %arg1: memref<8xi32, #tpu.memory_space<smem>>) -> (i32, i32) {
    %c0_i32 = arith.constant 0 : i32
    %c0_i32_0 = arith.constant 0 : i32
    %c0_i32_1 = arith.constant 0 : i32
    return %c0_i32, %c0_i32_0 : i32, i32
  }
  func.func @transform_1(%arg0: i32, %arg1: memref<8xi32, #tpu.memory_space<smem>>) -> (i32, i32) {
    %c0_i32 = arith.constant 0 : i32
    %c0_i32_0 = arith.constant 0 : i32
    %c0_i32_1 = arith.constant 0 : i32
    return %c0_i32, %c0_i32_0 : i32, i32
  }
  func.func @transform_2(%arg0: i32, %arg1: memref<8xi32, #tpu.memory_space<smem>>) -> (i32, i32) {
    %c0_i32 = arith.constant 0 : i32
    %c0_i32_0 = arith.constant 0 : i32
    %c0_i32_1 = arith.constant 0 : i32
    return %c0_i32, %c0_i32_0 : i32, i32
  }
  func.func @transform_3(%arg0: i32, %arg1: memref<8xi32, #tpu.memory_space<smem>>) -> (i32, i32) {
    %c0_i32 = arith.constant 0 : i32
    %c0_i32_0 = arith.constant 0 : i32
    %c0_i32_1 = arith.constant 0 : i32
    return %c0_i32, %c0_i32_0 : i32, i32
  }
  func.func @transform_4(%arg0: i32, %arg1: memref<8xi32, #tpu.memory_space<smem>>) -> (i32, i32) {
    %c0_i32 = arith.constant 0 : i32
    %c0_i32_0 = arith.constant 0 : i32
    %c0_i32_1 = arith.constant 0 : i32
    return %c0_i32, %c0_i32_0 : i32, i32
  }
  func.func @transform_5(%arg0: i32, %arg1: memref<8xi32, #tpu.memory_space<smem>>) -> (i32, i32) {
    %c0_i32 = arith.constant 0 : i32
    %c0_i32_0 = arith.constant 0 : i32
    %c0_i32_1 = arith.constant 0 : i32
    return %c0_i32, %c0_i32_0 : i32, i32
  }
  func.func @transform_6(%arg0: i32, %arg1: memref<8xi32, #tpu.memory_space<smem>>) -> (i32, i32) {
    %c0_i32 = arith.constant 0 : i32
    %c0_i32_0 = arith.constant 0 : i32
    %c0_i32_1 = arith.constant 0 : i32
    return %c0_i32, %c0_i32_0 : i32, i32
  }
}

</mosaic_0001>

<bundles_post_ra>
// kernel: tpu_custom_call.1
= control target key start
LH: loop header
LB: loop body
LE: loop exit
PB: predicated region body
PF: predicated region fallthrough
CT: control target
= control target key end

     0   :  { %s3609_s0 = inlined_call_operand.hbm [shape: s32[8], index: 0, kind: input, shape index: {}]   ;;  %s3610_s1 = inlined_call_operand.hbm [shape: f32[64,128], index: 1, kind: input, shape index: {}]   ;;  %s3611_s2 = inlined_call_operand.vmem [shape: f32[1,128], index: 2, kind: input, shape index: {}]   ;;  %s3612_s3 = inlined_call_operand.hbm [shape: f32[128,384], index: 3, kind: input, shape index: {}]   ;;  %s3613_s4 = inlined_call_operand.hbm [shape: f32[128,384], index: 4, kind: input, shape index: {}]   ;;  %s3614_s5 = inlined_call_operand.vmem [shape: f32[1,384], index: 5, kind: input, shape index: {}]   ;;  %s3615_s6 = inlined_call_operand.vmem [shape: f32[1,128], index: 6, kind: input, shape index: {}]   ;;  %s3616_s7 = inlined_call_operand.hbm [shape: f32[8,128], index: 7, kind: output, shape index: {}]  }
   0x1   :  { %s2923_s26 = scalar_lea.hbm %s3609_s0, 16 }
   0x2   :  { %p2924_p0 = scmp.ne.s32.totalorder %s3609_s0, %s2923_s26  ;;  %p2927_p1 = scmp.lt.u32.totalorder %s2923_s26, %s3609_s0 }
   0x4   :  { %p2929_p2 = pnand %p2927_p1, %p2924_p0 }
   0x6   :  { %2932 = shalt.err (!%p2929_p2)  }
   0x7   :  { %s3029_s8 = smov [#allocation3]  }
   0x8   :  { %13 = dma.hbm_to_smem %s3609_s0, 16, %s3029_s8, [#allocation2] }
   0x9   :  { %3021 = dma.done.wait [#allocation2], 16 }
   0xa   :  { %3022 = vsyncadd [#allocation2], 4294967280 }
   0xb   :  { %15 = sfence }
   0xc   :  { %16 = vsyncpa [#allocation5], 0 }
   0xd   :  { %17 = vsyncpa [#allocation8], 0 }
   0xe   :  { %18 = vsyncpa [#allocation6], 0  ;;  %s3030_s11 = smov [#allocation7]   ;;  %s2933_s15 = scalar_lea.hbm %s3612_s3, 6144 }
   0xf   :  { %s38_s12 = sshll.u32 %s3030_s11, 4  ;;  %p2934_p3 = scmp.ne.s32.totalorder %s3612_s3, %s2933_s15  ;;  %s39_s12 = int_to_ptr.vmem [resolvable:$true] %s38_s12 }
  0x10   :  { %p2937_p4 = scmp.lt.u32.totalorder %s2933_s15, %s3612_s3 }
  0x12   :  { %p2939_p5 = pnand %p2937_p4, %p2934_p3 }
  0x14   :  { %2942 = shalt.err (!%p2939_p5)
}
  0x15   :  { %s2943_s0 = scalar_lea.vmem %s39_s12, 6144  ;;  %p2948_p7 = scmp.lt.s32.totalorder %s39_s12, %s39_s12 }
  0x16   :  { %p2944_p6 = scmp.ne.s32.totalorder %s39_s12, %s2943_s0  ;;  %p2949_p8 = scmp.lt.s32.totalorder %s2943_s0, %s2943_s0 }
  0x18   :  { %p2950_p9 = por %p2949_p8, %p2948_p7 }
  0x1a   :  { %p2951_p10 = pnand %p2950_p9, %p2944_p6 }
  0x1c   :  { %2954 = shalt.err (!%p2951_p10)
}
  0x1d   :  { %s3031_s20 = smov 384   ;;  %s3032_s21 = smov 24  }
  0x1e   :  { %44 = dma.hbm_to_vmem [thread:$0]  %s3612_s3, 6144, %s39_s12, [#allocation8], %s3031_s20, %s3031_s20, %s3032_s21  }
  0x1f   :  { %s3033_s24 = smov [#allocation4]   ;;  %s2955_s28 = scalar_lea.hbm %s3610_s1, 1024 }
  0x20   :  { %s24_s25 = sshll.u32 %s3033_s24, 4  ;;  %p2956_p11 = scmp.ne.s32.totalorder %s3610_s1, %s2955_s28  ;;  %s25_s25 = int_to_ptr.vmem [resolvable:$true] %s24_s25 }
  0x21   :  { %p2959_p12 = scmp.lt.u32.totalorder %s2955_s28, %s3610_s1 }
  0x23   :  { %p2961_p13 = pnand %p2959_p12, %p2956_p11 }
  0x25   :  { %2964 = shalt.err (!%p2961_p13)
}
  0x26   :  { %s2965_s10 = scalar_lea.vmem %s25_s25, 1024  ;;  %p2970_p1 = scmp.lt.s32.totalorder %s25_s25, %s25_s25 }
  0x27   :  { %p2966_p0 = scmp.ne.s32.totalorder %s25_s25, %s2965_s10  ;;  %p2971_p2 = scmp.lt.s32.totalorder %s2965_s10, %s2965_s10 }
  0x29   :  { %p2972_p3 = por %p2971_p2, %p2970_p1 }
  0x2b   :  { %p2973_p4 = pnand %p2972_p3, %p2966_p0 }
  0x2d   :  { %2976 = shalt.err (!%p2973_p4)
}
  0x2e   :  { %s3034_s3 = smov 128   ;;  %s3035_s11 = smov 8  }
  0x2f   :  { %30 = dma.hbm_to_vmem [thread:$0]  %s3610_s1, 1024, %s25_s25, [#allocation5], %s3034_s3, %s3034_s3, %s3035_s11  }
  0x30   :  { %s3036_s14 = smov [#allocation9]   ;;  %s2977_s18 = scalar_lea.hbm %s3613_s4, 6144 }
  0x31   :  { %s50_s15 = sshll.u32 %s3036_s14, 4  ;;  %p2978_p5 = scmp.ne.s32.totalorder %s3613_s4, %s2977_s18  ;;  %s51_s15 = int_to_ptr.vmem [resolvable:$true] %s50_s15 }
  0x32   :  { %p2981_p6 = scmp.lt.u32.totalorder %s2977_s18, %s3613_s4 }
  0x34   :  { %p2983_p7 = pnand %p2981_p6, %p2978_p5 }
  0x36   :  { %2986 = shalt.err (!%p2983_p7)
}
  0x37   :  { %s2987_s24 = scalar_lea.vmem %s51_s15, 6144  ;;  %p2992_p9 = scmp.lt.s32.totalorder %s51_s15, %s51_s15 }
  0x38   :  { %p2988_p8 = scmp.ne.s32.totalorder %s51_s15, %s2987_s24  ;;  %p2993_p10 = scmp.lt.s32.totalorder %s2987_s24, %s2987_s24 }
  0x3a   :  { %p2994_p11 = por %p2993_p10, %p2992_p9 }
  0x3c   :  { %p2995_p12 = pnand %p2994_p11, %p2988_p8 }
  0x3e   :  { %2998 = shalt.err (!%p2995_p12)
}
  0x3f   :  { %56 = dma.hbm_to_vmem [thread:$0]  %s3613_s4, 6144, %s51_s15, [#allocation8], %s3031_s20, %s3031_s20, %s3032_s21  }
  0x40   :  { %3023 = dma.done.wait [#allocation5], 1024  }
  0x41   :  { %3024 = vsyncadd [#allocation5], 4294966272 }
  0x42   :  { %3025 = dma.done.wait [#allocation8], 12288  }
  0x43   :  { %3026 = vsyncadd [#allocation8], 4294955008  ;;  %v3037_v0 = vmov 0.0|0.0   ;;  %v3038_v1 = vmov 0.0   ;;  %vm3039_vm0 = vmmov 0   ;;  %s3139_s26 = sld [smem:[#allocation3]] }
  0x44   :  { %2359 = vmatprep.subr.bf16.mxu1 %v3037_v0  ;;  %258 = vmatprep.mubr.f32.mxu0 %v3038_v1  ;;  %v130_v2 = vld [vmem:[#allocation7 + $0x8] sm:$0xff]  ;;  %v133_v3 = vld [vmem:[#allocation7 + $0x20] sm:$0xff]  ;;  %s3141_s4 = sld [smem:[#allocation3 + $0x1]]  ;;  %v132_v6 = vld [vmem:[#allocation7 + $0x18] sm:$0xff]  ;;  %s3143_s20 = sld [smem:[#allocation3 + $0x2]]  ;;  %vm115_vm1 = vcmask 1040384  }
  0x45   :  { %2044 = vmatprep.mubr.msk.f32.mxu1 %vm3039_vm0, %v3038_v1  ;;  %v129_v4 = vld [vmem:[#allocation7] sm:$0xff]  ;;  %v2327_v5 = vpack.c.bf16 %v133_v3, %v130_v2  ;;  %v136_v7 = vld [vmem:[#allocation7 + $0x38] sm:$0xff]  ;;  %v139_v8 = vld [vmem:[#allocation7 + $0x50] sm:$0xff]  ;;  %s3145_s21 = sld [smem:[#allocation3 + $0x3]]  ;;  %s3147_s27 = sld [smem:[#allocation3 + $0x4]]  ;;  %vm117_vm2 = vcmask 1041408  }
  0x46   :  { %v2329_v9 = vpack.c.bf16 %v132_v6, %v129_v4  ;;  %v2331_v10 = vpack.c.bf16 %v139_v8, %v136_v7  ;;  %v135_v11 = vld [vmem:[#allocation7 + $0x30] sm:$0xff]  ;;  %v138_v12 = vld [vmem:[#allocation7 + $0x48] sm:$0xff]  ;;  %v145_v14 = vld [vmem:[#allocation7 + $0x80] sm:$0xff]  ;;  %s3149_s28 = sld [smem:[#allocation3 + $0x5]]  ;;  %s3151_s29 = sld [smem:[#allocation3 + $0x6]]  ;;  %vm119_vm3 = vcmask 1042432  }
  0x47   :  { %v142_v13 = vld [vmem:[#allocation7 + $0x68] sm:$0xff]  ;;  %2328 = vmatprep.subr.bf16.mxu0 %v2327_v5  ;;  %v2333_v15 = vpack.c.bf16 %v138_v12, %v135_v11  ;;  %v141_v17 = vld [vmem:[#allocation7 + $0x60] sm:$0xff]  ;;  %v144_v18 = vld [vmem:[#allocation7 + $0x78] sm:$0xff]  ;;  %s3158_s3 = sld [smem:[#allocation3 + $0x7]]  ;;  %vm121_vm4 = vcmask 1043456   ;;  %vm123_vm5 = vcmask 1044480  }
  0x48   :  { %2330 = vmatpush1.bf16.msra.mxu0 %v2329_v9  ;;  %v2335_v16 = vpack.c.bf16 %v145_v14, %v142_v13  ;;  %v148_v19 = vld [vmem:[#allocation7 + $0x98] sm:$0xff]  ;;  %v151_v20 = vld [vmem:[#allocation7 + $0xb0] sm:$0xff]  ;;  %v2337_v21 = vpack.c.bf16 %v144_v18, %v141_v17  ;;  %v150_v24 = vld [vmem:[#allocation7 + $0xa8] sm:$0xff]  ;;  %vm125_vm6 = vcmask 1045504   ;;  %vm127_vm7 = vcmask 1046528  }
  0x49   :  { %2332 = vmatprep.subr.bf16.mxu0 %v2331_v10  ;;  %v147_v22 = vld [vmem:[#allocation7 + $0x90] sm:$0xff]  ;;  %v2339_v23 = vpack.c.bf16 %v151_v20, %v148_v19  ;;  %v134_v26 = vld [vmem:[#allocation7 + $0x28] sm:$0xff]  ;;  %v157_v28 = vld [vmem:[#allocation7 + $0xe0] sm:$0xff]  ;;  %s71_s9 = scalar_lea.vmem [#allocation4], %s3139_s26 }
  0x4a   :  { %v131_v25 = vld [vmem:[#allocation7 + $0x10] sm:$0xff]  ;;  %v154_v27 = vld [vmem:[#allocation7 + $0xc8] sm:$0xff]  ;;  %v137_v30 = vld [vmem:[#allocation7 + $0x40] sm:$0xff]  ;;  %v2341_v32 = vpack.c.bf16 %v150_v24, %v147_v22  ;;  %s74_s30 = scalar_lea.vmem [#allocation4], %s3141_s4  ;;  %s77_s8 = scalar_lea.vmem [#allocation4], %s3143_s20 }
  0x4b   :  { %v2360_v29 = vpack.c.bf16 %v134_v26, %v131_v25  ;;  %v140_v31 = vld [vmem:[#allocation7 + $0x58] sm:$0xff]  ;;  %v153_v33 = vld [vmem:[#allocation7 + $0xc0] sm:$0xff]  ;;  %v2343_v37 = vpack.c.bf16 %v157_v28, %v154_v27  ;;  %s80_s10 = scalar_lea.vmem [#allocation4], %s3145_s21  ;;  %v163_v42 = vld [vmem:[#allocation7 + $0x110] sm:$0xff]  ;;  %s83_s11 = scalar_lea.vmem [#allocation4], %s3147_s27 }
  0x4c   :  { %2334 = vmatpush1.bf16.msra.mxu0 %v2333_v15  ;;  %v2363_v34 = vpack.c.bf16 %v140_v31, %v137_v30  ;;  %v75_v35 = vld [vmem:[%s74_s30] sm:$0x1]  ;;  %v143_v49 = vld [vmem:[#allocation7 + $0x70] sm:$0xff]  ;;  %v162_v52 = vld [vmem:[#allocation7 + $0x108] sm:$0xff]  ;;  %s86_s12 = scalar_lea.vmem [#allocation4], %s3149_s28  ;;  %s89_s13 = scalar_lea.vmem [#allocation4], %s3151_s29 }
  0x4d   :  { %2336 = vmatprep.subr.bf16.mxu0 %v2335_v16  ;;  %2361 = vmatpush3.bf16.msra.mxu1 %v2360_v29  ;;  %v78_v36 = vld [vmem:[%s77_s8] sm:$0x1]  ;;  %v95_v43 = vrot.slane %v75_v35, 7  ;;  %v159_v51 = vld [vmem:[#allocation7 + $0xf0] sm:$0xff]  ;;  %v146_v54 = vld [vmem:[#allocation7 + $0x88] sm:$0xff]  ;;  %s92_s14 = scalar_lea.vmem [#allocation4], %s3158_s3 }
  0x4e   :  { %v156_v38 = vld [vmem:[#allocation7 + $0xd8] sm:$0xff]  ;;  %2362 = vmatprep.subr.bf16.mxu1 %v3037_v0  ;;  %v98_v44 = vrot.slane %v78_v36, 6  ;;  %v166_v55 = vld [vmem:[#allocation7 + $0x128] sm:$0xff]  ;;  %v169_v56 = vld [vmem:[#allocation7 + $0x140] sm:$0xff]  ;;  %v2366_v57 = vpack.c.bf16 %v146_v54, %v143_v49  ;;  %v2349_v62 = vpack.c.bf16 %v162_v52, %v159_v51 }
  0x4f   :  { %v72_v39 = vld [vmem:[%s71_s9] sm:$0x1]  ;;  %v2345_v45 = vpack.c.bf16 %v156_v38, %v153_v33  ;;  %v149_v58 = vld [vmem:[#allocation7 + $0xa0] sm:$0xff]  ;;  %v2351_v4 = vpack.c.bf16 %v169_v56, %v166_v55  ;;  %v155_v6 = vld [vmem:[#allocation7 + $0xd0] sm:$0xff] }
  0x50   :  { %2338 = vmatpush1.bf16.msra.mxu0 %v2337_v21  ;;  %v81_v40 = vld [vmem:[%s80_s10] sm:$0x1]  ;;  %v116_v48 = vsel %vm115_vm1, %v72_v39, %v95_v43  ;;  %v165_v63 = vld [vmem:[#allocation7 + $0x120] sm:$0xff]  ;;  %v158_v7 = vld [vmem:[#allocation7 + $0xe8] sm:$0xff] }
  0x51   :  { %2340 = vmatprep.subr.bf16.mxu0 %v2339_v23  ;;  %v160_v41 = vld [vmem:[#allocation7 + $0xf8] sm:$0xff]  ;;  %2364 = vmatpush3.bf16.msra.mxu1 %v2363_v34  ;;  %v101_v47 = vrot.slane %v81_v40, 5  ;;  %v118_v53 = vsel %vm117_vm2, %v116_v48, %v98_v44  ;;  %v175_v9 = vld [vmem:[#allocation7 + $0x170] sm:$0xff]  ;;  %v174_v15 = vld [vmem:[#allocation7 + $0x168] sm:$0xff]  ;;  %v2372_v16 = vpack.c.bf16 %v158_v7, %v155_v6 }
  0x52   :  { %v84_v46 = vld [vmem:[%s83_s11] sm:$0x1]  ;;  %v2347_v50 = vpack.c.bf16 %v163_v42, %v160_v41  ;;  %2365 = vmatprep.subr.bf16.mxu1 %v3037_v0  ;;  %v171_v14 = vld [vmem:[#allocation7 + $0x150] sm:$0xff]  ;;  %v161_v20 = vld [vmem:[#allocation7 + $0x100] sm:$0xff] }
  0x53   :  { %v87_v59 = vld [vmem:[%s86_s12] sm:$0x1]  ;;  %v104_v60 = vrot.slane %v84_v46, 4  ;;  %v120_v2 = vsel %vm119_vm3, %v118_v53, %v101_v47  ;;  %v338_v23 = vld [vmem:[#allocation9 + $0x8] sm:$0xff]  ;;  %v341_v24 = vld [vmem:[#allocation9 + $0x20] sm:$0xff]  ;;  %v2357_v25 = vpack.c.bf16 %v174_v15, %v171_v14 }
  0x54   :  { %2342 = vmatpush1.bf16.msra.mxu0 %v2341_v32  ;;  %v152_v61 = vld [vmem:[#allocation7 + $0xb8] sm:$0xff]  ;;  %v107_v11 = vrot.slane %v87_v59, 3  ;;  %v337_v27 = vld [vmem:[#allocation9] sm:$0xff]  ;;  %v3173_v30 = vpack.c.bf16 %v341_v24, %v338_v23  ;;  %v167_v32 = vld [vmem:[#allocation7 + $0x130] sm:$0xff] }
  0x55   :  { %2344 = vmatprep.subr.bf16.mxu0 %v2343_v37  ;;  %2367 = vmatpush3.bf16.msra.mxu1 %v2366_v57  ;;  %v2369_v3 = vpack.c.bf16 %v152_v61, %v149_v58  ;;  %v168_v5 = vld [vmem:[#allocation7 + $0x138] sm:$0xff]  ;;  %v122_v12 = vsel %vm121_vm4, %v120_v2, %v104_v60  ;;  %v170_v33 = vld [vmem:[#allocation7 + $0x148] sm:$0xff]  ;;  %v347_v35 = vld [vmem:[#allocation9 + $0x50] sm:$0xff] }
  0x56   :  { %2368 = vmatprep.subr.bf16.mxu1 %v3037_v0  ;;  %v172_v8 = vld [vmem:[#allocation7 + $0x158] sm:$0xff]  ;;  %v2353_v13 = vpack.c.bf16 %v168_v5, %v165_v63  ;;  %v124_v22 = vsel %vm123_vm5, %v122_v12, %v107_v11  ;;  %v343_v38 = vld [vmem:[#allocation9 + $0x30] sm:$0xff]  ;;  %v2378_v39 = vpack.c.bf16 %v170_v33, %v167_v32  ;;  %v346_v41 = vld [vmem:[#allocation9 + $0x48] sm:$0xff] }
  0x57   :  { %v90_v10 = vld [vmem:[%s89_s13] sm:$0x1]  ;;  %v2355_v17 = vpack.c.bf16 %v175_v9, %v172_v8  ;;  %v173_v42 = vld [vmem:[#allocation7 + $0x160] sm:$0xff]  ;;  %v350_v44 = vld [vmem:[#allocation9 + $0x68] sm:$0xff]  ;;  %v3184_v46 = vpack.c.bf16 %v346_v41, %v343_v38 }
  0x58   :  { %2346 = vmatpush1.bf16.msra.mxu0 %v2345_v45  ;;  %v93_v18 = vld [vmem:[%s92_s14] sm:$0x1]  ;;  %v110_v19 = vrot.slane %v90_v10, 2  ;;  %v353_v45 = vld [vmem:[#allocation9 + $0x80] sm:$0xff]  ;;  %v339_v51 = vld [vmem:[#allocation9 + $0x10] sm:$0xff] }
  0x59   :  { %2348 = vmatprep.subr.bf16.mxu0 %v2347_v50  ;;  %2370 = vmatpush3.bf16.msra.mxu1 %v2369_v3  ;;  %v164_v21 = vld [vmem:[#allocation7 + $0x118] sm:$0xff]  ;;  %v113_v26 = vrot.slane %v93_v18, 1  ;;  %v349_v47 = vld [vmem:[#allocation9 + $0x60] sm:$0xff]  ;;  %v3187_v49 = vpack.c.bf16 %v353_v45, %v350_v44  ;;  %v342_v52 = vld [vmem:[#allocation9 + $0x28] sm:$0xff] }
  0x5a   :  { %2371 = vmatprep.subr.bf16.mxu1 %v3037_v0  ;;  %v2375_v28 = vpack.c.bf16 %v164_v21, %v161_v20  ;;  %v126_v29 = vsel %vm125_vm6, %v124_v22, %v110_v19  ;;  %v340_v31 = vld [vmem:[#allocation9 + $0x18] sm:$0xff]  ;;  %v359_v54 = vld [vmem:[#allocation9 + $0xb0] sm:$0xff]  ;;  %v3194_v57 = vpack.c.bf16 %v342_v52, %v339_v51  ;;  %v358_v59 = vld [vmem:[#allocation9 + $0xa8] sm:$0xff] }
  0x5b   :  { %v344_v34 = vld [vmem:[#allocation9 + $0x38] sm:$0xff]  ;;  %v128_v36 = vsel %vm127_vm7, %v126_v29, %v113_v26  ;;  %v3177_v37 = vpack.c.bf16 %v340_v31, %v337_v27  ;;  %v355_v56 = vld [vmem:[#allocation9 + $0x90] sm:$0xff]  ;;  %v345_v60 = vld [vmem:[#allocation9 + $0x40] sm:$0xff] }
  0x5c   :  { %2350 = vmatpush1.bf16.msra.mxu0 %v2349_v62  ;;  %v3180_v40 = vpack.c.bf16 %v347_v35, %v344_v34  ;;  %v176_v43 = vld [vmem:[#allocation7 + $0x178] sm:$0xff]  ;;  %v362_v62 = vld [vmem:[#allocation9 + $0xc8] sm:$0xff]  ;;  %v365_v63 = vld [vmem:[#allocation9 + $0xe0] sm:$0xff]  ;;  %v3201_v2 = vpack.c.bf16 %v358_v59, %v355_v56 }
  0x5d   :  { %2352 = vmatprep.subr.bf16.mxu0 %v2351_v4  ;;  %2373 = vmatpush3.bf16.msra.mxu1 %v2372_v16  ;;  %v2381_v48 = vpack.c.bf16 %v176_v43, %v173_v42  ;;  %v352_v50 = vld [vmem:[#allocation9 + $0x78] sm:$0xff]  ;;  %v361_v3 = vld [vmem:[#allocation9 + $0xc0] sm:$0xff]  ;;  %v3207_v5 = vpack.c.bf16 %v365_v63, %v362_v62  ;;  %v351_v7 = vld [vmem:[#allocation9 + $0x70] sm:$0xff] }
  0x5e   :  { %2374 = vmatprep.subr.bf16.mxu1 %v3037_v0  ;;  %v356_v53 = vld [vmem:[#allocation9 + $0x98] sm:$0xff]  ;;  %v3192_v55 = vpack.c.bf16 %v352_v50, %v349_v47  ;;  %v354_v8 = vld [vmem:[#allocation9 + $0x88] sm:$0xff]  ;;  %v371_v10 = vld [vmem:[#allocation9 + $0x110] sm:$0xff] }
  0x5f   :  { %v3197_v58 = vpack.c.bf16 %v359_v54, %v356_v53  ;;  %v348_v61 = vld [vmem:[#allocation9 + $0x58] sm:$0xff]  ;;  %v367_v12 = vld [vmem:[#allocation9 + $0xf0] sm:$0xff]  ;;  %v370_v15 = vld [vmem:[#allocation9 + $0x108] sm:$0xff]  ;;  %v179_v54 = vlaneseq }
  0x60   :  { %2354 = vmatpush1.bf16.msra.mxu0 %v2353_v13  ;;  %v3204_v4 = vpack.c.bf16 %v348_v61, %v345_v60  ;;  %v364_v6 = vld [vmem:[#allocation9 + $0xd8] sm:$0xff]  ;;  %v3216_v13 = vpack.c.bf16 %v354_v8, %v351_v7  ;;  %v357_v16 = vld [vmem:[#allocation9 + $0xa0] sm:$0xff]  ;;  %v374_v18 = vld [vmem:[#allocation9 + $0x128] sm:$0xff]  ;;  %v3223_v20 = vpack.c.bf16 %v370_v15, %v367_v12 }
  0x61   :  { %2356 = vmatprep.subr.bf16.mxu0 %v2355_v17  ;;  %2376 = vmatpush3.bf16.msra.mxu1 %v2375_v28  ;;  %v368_v9 = vld [vmem:[#allocation9 + $0xf8] sm:$0xff]  ;;  %v3213_v11 = vpack.c.bf16 %v364_v6, %v361_v3  ;;  %v377_v19 = vld [vmem:[#allocation9 + $0x140] sm:$0xff]  ;;  %v366_v26 = vld [vmem:[#allocation9 + $0xe8] sm:$0xff]  ;;  %v180_v56 = vshrl.u32 %v179_v54, 7 }
  0x62   :  { %2377 = vmatprep.subr.bf16.mxu1 %v3037_v0  ;;  %v3219_v14 = vpack.c.bf16 %v371_v10, %v368_v9  ;;  %v360_v17 = vld [vmem:[#allocation9 + $0xb8] sm:$0xff]  ;;  %v373_v21 = vld [vmem:[#allocation9 + $0x120] sm:$0xff]  ;;  %v3229_v23 = vpack.c.bf16 %v377_v19, %v374_v18  ;;  %v383_v28 = vld [vmem:[#allocation9 + $0x170] sm:$0xff] }
  0x63   :  { %v3226_v22 = vpack.c.bf16 %v360_v17, %v357_v16  ;;  %v376_v24 = vld [vmem:[#allocation9 + $0x138] sm:$0xff]  ;;  %v379_v31 = vld [vmem:[#allocation9 + $0x150] sm:$0xff]  ;;  %v382_v34 = vld [vmem:[#allocation9 + $0x168] sm:$0xff]  ;;  %v181_v59 = vsub.s32 0, %v180_v56  ;;  %v185_v63 = vsub.s32 1, %v180_v56 }
  0x64   :  { %2358 = vmatpush1.bf16.msra.mxu0 %v2357_v25  ;;  %v363_v25 = vld [vmem:[#allocation9 + $0xd0] sm:$0xff]  ;;  %v380_v27 = vld [vmem:[#allocation9 + $0x158] sm:$0xff]  ;;  %v3233_v29 = vpack.c.bf16 %v376_v24, %v373_v21  ;;  %v369_v35 = vld [vmem:[#allocation9 + $0x100] sm:$0xff]  ;;  %v3243_v38 = vpack.c.bf16 %v382_v34, %v379_v31  ;;  %v189_v21 = vsub.s32 2, %v180_v56 }
  0x65   :  { %2384 = vmatprep.subr.bf16.mxu0 %v3173_v30  ;;  %2379 = vmatpush3.bf16.msra.mxu1 %v2378_v39  ;;  %v3236_v32 = vpack.c.bf16 %v366_v26, %v363_v25  ;;  %v3239_v33 = vpack.c.bf16 %v383_v28, %v380_v27  ;;  %v375_v41 = vld [vmem:[#allocation9 + $0x130] sm:$0xff]  ;;  %v378_v42 = vld [vmem:[#allocation9 + $0x148] sm:$0xff]  ;;  %v3254_v43 = vld [vmem:[%s3611_s2] sm:$0x1] }
  0x66   :  { %2380 = vmatprep.subr.bf16.mxu1 %v3037_v0  ;;  %v3257_v44 = vpack.c.bf16 %v378_v42, %v375_v41  ;;  %v381_v45 = vld [vmem:[#allocation9 + $0x160] sm:$0xff]  ;;  %v384_v47 = vld [vmem:[#allocation9 + $0x178] sm:$0xff] }
  0x67   :  { %259 = vmatmul.mubr.f32.vlgmr.msra.gmra.mrb[0].mxu0 %v128_v36  ;;  %v177_v60 = vld [vmem:[%s3614_s5] sm:$0x7] }
  0x68   :  { %2386 = vmatpush1.bf16.msra.mxu0 %v3177_v37  ;;  %449 = vmatprep.mubr.f32.mxu0 %v3038_v1  ;;  %v182_v61 = vrot.slane %v177_v60, %v181_v59  ;;  %v186_v8 = vrot.slane %v177_v60, %v185_v63  ;;  %v3316_v24 = vld [vmem:[%s3615_s6] sm:$0x1]  ;;  %v190_v25 = vrot.slane %v177_v60, %v189_v21  ;;  %s3040_s6 = smov [#allocation10]  }
  0x69   :  { %2388 = vmatprep.subr.bf16.mxu0 %v3180_v40  ;;  %2382 = vmatpush3.bf16.msra.mxu1 %v2381_v48  ;;  %v3263_v48 = vpack.c.bf16 %v384_v47, %v381_v45  ;;  %s1818_s19 = sshll.u32 %s3040_s6, 4  ;;  %s1819_s19 = int_to_ptr.vmem [resolvable:$true] %s1818_s19 }
  0x6a   :  { %2415 = vmatprep.subr.bf16.mxu1 %v3037_v0  ;;  %s2999_s0 = scalar_lea.vmem %s1819_s19, 128  ;;  %p3004_p0 = scmp.lt.s32.totalorder %s1819_s19, %s1819_s19 }
  0x6b   :  { %p3000_p13 = scmp.ne.s32.totalorder %s1819_s19, %s2999_s0  ;;  %p3005_p1 = scmp.lt.s32.totalorder %s2999_s0, %s2999_s0 }
  0x6c   :  { %2390 = vmatpush1.bf16.msra.mxu0 %v3184_v46  ;;  %2045 = vmatmul.mubr.f32.vlgmr.msra.gmra.mrb[0].mxu1 %v128_v36  ;;  %v372_v36 = vld [vmem:[#allocation9 + $0x118] sm:$0xff] }
  0x6d   :  { %2392 = vmatprep.subr.bf16.mxu0 %v3187_v49  ;;  %2417 = vmatpush3.bf16.msra.mxu1 %v3194_v57  ;;  %v3246_v39 = vpack.c.bf16 %v372_v36, %v369_v35  ;;  %p3006_p2 = por %p3005_p1, %p3004_p0 }
  0x6e   :  { %2418 = vmatprep.subr.bf16.mxu1 %v3037_v0  ;;  %2079 = vmatprep.mubr.msk.f32.mxu1 %vm3039_vm0, %v3038_v1 }
  0x6f   :  { %p3007_p3 = pnand %p3006_p2, %p3000_p13 }
  0x70   :  { %2394 = vmatpush1.bf16.msra.mxu0 %v3192_v55 }
  0x71   :  { %2396 = vmatprep.subr.bf16.mxu0 %v3197_v58  ;;  %2420 = vmatpush3.bf16.msra.mxu1 %v3204_v4 }
  0x72   :  { %2421 = vmatprep.subr.bf16.mxu1 %v3037_v0 }
  0x74   :  { %2398 = vmatpush1.bf16.msra.mxu0 %v3201_v2 }
  0x75   :  { %2400 = vmatprep.subr.bf16.mxu0 %v3207_v5  ;;  %2423 = vmatpush3.bf16.msra.mxu1 %v3216_v13 }
  0x76   :  { %2424 = vmatprep.subr.bf16.mxu1 %v3037_v0 }
  0x78   :  { %2402 = vmatpush1.bf16.msra.mxu0 %v3213_v11 }
  0x79   :  { %2404 = vmatprep.subr.bf16.mxu0 %v3219_v14  ;;  %2426 = vmatpush3.bf16.msra.mxu1 %v3226_v22 }
  0x7a   :  { %2427 = vmatprep.subr.bf16.mxu1 %v3037_v0 }
  0x7c   :  { %2406 = vmatpush1.bf16.msra.mxu0 %v3223_v20 }
  0x7d   :  { %2408 = vmatprep.subr.bf16.mxu0 %v3229_v23  ;;  %2429 = vmatpush3.bf16.msra.mxu1 %v3236_v32 }
  0x7e   :  { %2430 = vmatprep.subr.bf16.mxu1 %v3037_v0 }
  0x80   :  { %2410 = vmatpush1.bf16.msra.mxu0 %v3233_v29 }
  0x81   :  { %2412 = vmatprep.subr.bf16.mxu0 %v3239_v33  ;;  %2432 = vmatpush3.bf16.msra.mxu1 %v3246_v39 }
  0x82   :  { %2433 = vmatprep.subr.bf16.mxu1 %v3037_v0 }
  0x84   :  { %2414 = vmatpush1.bf16.msra.mxu0 %v3243_v38 }
  0x85   :  { %2440 = vmatprep.subr.bf16.mxu0 %v3173_v30  ;;  %2435 = vmatpush3.bf16.msra.mxu1 %v3257_v44 }
  0x86   :  { %2436 = vmatprep.subr.bf16.mxu1 %v3037_v0 }
  0x87   :  { %450 = vmatmul.mubr.f32.vlgmr.msra.gmra.mrb[2].mxu0 %v3254_v43 }
  0x88   :  { %2442 = vmatpush1.bf16.msra.mxu0 %v3177_v37  ;;  %611 = vmatprep.mubr.f32.mxu0 %v3038_v1 }
  0x89   :  { %2444 = vmatprep.subr.bf16.mxu0 %v3180_v40  ;;  %2438 = vmatpush3.bf16.msra.mxu1 %v3263_v48 }
  0x8a   :  { %2471 = vmatprep.subr.bf16.mxu1 %v3037_v0 }
  0x8c   :  { %2446 = vmatpush1.bf16.msra.mxu0 %v3184_v46  ;;  %2080 = vmatmul.mubr.f32.vlgmr.msra.gmra.mrb[2].mxu1 %v3254_v43 }
  0x8d   :  { %2448 = vmatprep.subr.bf16.mxu0 %v3187_v49  ;;  %2473 = vmatpush3.bf16.msra.mxu1 %v3194_v57 }
  0x8e   :  { %2474 = vmatprep.subr.bf16.mxu1 %v3037_v0  ;;  %2114 = vmatprep.mubr.msk.f32.mxu1 %vm3039_vm0, %v3038_v1 }
  0x90   :  { %2450 = vmatpush1.bf16.msra.mxu0 %v3192_v55 }
  0x91   :  { %2452 = vmatprep.subr.bf16.mxu0 %v3197_v58  ;;  %2476 = vmatpush3.bf16.msra.mxu1 %v3204_v4 }
  0x92   :  { %2477 = vmatprep.subr.bf16.mxu1 %v3037_v0 }
  0x94   :  { %2454 = vmatpush1.bf16.msra.mxu0 %v3201_v2 }
  0x95   :  { %2456 = vmatprep.subr.bf16.mxu0 %v3207_v5  ;;  %2479 = vmatpush3.bf16.msra.mxu1 %v3216_v13 }
  0x96   :  { %2480 = vmatprep.subr.bf16.mxu1 %v3037_v0 }
  0x98   :  { %2458 = vmatpush1.bf16.msra.mxu0 %v3213_v11 }
  0x99   :  { %2460 = vmatprep.subr.bf16.mxu0 %v3219_v14  ;;  %2482 = vmatpush3.bf16.msra.mxu1 %v3226_v22 }
  0x9a   :  { %2483 = vmatprep.subr.bf16.mxu1 %v3037_v0 }
  0x9c   :  { %2462 = vmatpush1.bf16.msra.mxu0 %v3223_v20 }
  0x9d   :  { %2464 = vmatprep.subr.bf16.mxu0 %v3229_v23  ;;  %2485 = vmatpush3.bf16.msra.mxu1 %v3236_v32 }
  0x9e   :  { %2486 = vmatprep.subr.bf16.mxu1 %v3037_v0 }
  0xa0   :  { %2466 = vmatpush1.bf16.msra.mxu0 %v3233_v29 }
  0xa1   :  { %2468 = vmatprep.subr.bf16.mxu0 %v3239_v33  ;;  %2488 = vmatpush3.bf16.msra.mxu1 %v3246_v39 }
  0xa2   :  { %2489 = vmatprep.subr.bf16.mxu1 %v3037_v0 }
  0xa4   :  { %2470 = vmatpush1.bf16.msra.mxu0 %v3243_v38 }
  0xa5   :  { %2496 = vmatprep.subr.bf16.mxu0 %v3173_v30  ;;  %2491 = vmatpush3.bf16.msra.mxu1 %v3257_v44 }
  0xa6   :  { %2492 = vmatprep.subr.bf16.mxu1 %v3037_v0 }
  0xa9   :  { %2494 = vmatpush3.bf16.msra.mxu1 %v3263_v48 }
  0xaa   :  { %2527 = vmatprep.subr.bf16.mxu1 %v3037_v0 }
 0x13a   :  { %v260_v50 = vpop.f32.mrb[0].mxu0 }
 0x13b   :  { %v262_v51 = vpop.f32.mrb[1].mxu0  ;;  %v3307_v62 = vadd.f32 %v260_v50, %v182_v61 }
 0x13c   :  { %v3310_v10 = vadd.f32 %v262_v51, %v186_v8 }
 0x13f   :  { %v331_v52 = vpop.f32.mrb[0].mxu1 }
 0x140   :  { %v2046_v53 = vpop.f32.mrb[1].mxu1  ;;  %v3319_v31 = vadd.f32 %v331_v52, %v190_v25 }
 0x15a   :  { %v451_v3 = vpop.f32.mrb[2].mxu0 }
 0x15b   :  { %v526_v6 = vadd.f32 %v451_v3, %v3307_v62  ;;  %v453_v7 = vpop.f32.mrb[3].mxu0 }
 0x15c   :  { %v533_v15 = vadd.f32 %v453_v7, %v3310_v10 }
 0x15d   :  { %v1843_v9 = vmul.f32 -1.442695, %v526_v6 }
 0x15e   :  { %v1844_v17 = vmul.f32 -1.442695, %v533_v15 }
 0x15f   :  { %2843 = vpow2.f32 %v1843_v9  ;;  %v522_v12 = vpop.f32.mrb[2].mxu1 }
 0x160   :  { %v2081_v16 = vpop.f32.mrb[3].mxu1  ;;  %2845 = vpow2.f32 %v1844_v17  ;;  %v540_v26 = vadd.f32 %v522_v12, %v3316_v24 }
 0x169   :  { %v2844_v18 = vpop.eup %2843 }
 0x16a   :  { %v530_v19 = vadd.f32 1.0, %v2844_v18  ;;  %v2846_v27 = vpop.eup %2845 }
 0x16b   :  { %v537_v35 = vadd.f32 1.0, %v2846_v27 }
 0x16c   :  { %2847 = vrcp.f32 %v530_v19 }
 0x176   :  { %v2848_v28 = vpop.eup %2847 }
 0x177   :  { %v541_v34 = vmul.f32 %v2848_v28, %v540_v26 }
 0x179   :  { %v542_v36 = vadd.f32 %v541_v34, %v3319_v31 }
 0x17b   :  { %2849 = vtanh.f32 %v542_v36 }
 0x17c   :  { %2851 = vrcp.f32 %v537_v35 }
 0x185   :  { %v2850_v41 = vpop.eup %2849 }
 0x186   :  { %v544_v42 = vsub.f32 %v3254_v43, %v2850_v41  ;;  %v2852_v45 = vpop.eup %2851 }
 0x188   :  { %v545_v47 = vmul.f32 %v2852_v45, %v544_v42 }
 0x18a   :  { %v3323_v50 = vadd.f32 %v2850_v41, %v545_v47 }
 0x18c   :  { %612 = vmatmul.mubr.f32.vlgmr.msra.gmra.mrb[4].mxu0 %v3323_v50  ;;  %2115 = vmatmul.mubr.f32.vlgmr.msra.gmra.mrb[4].mxu1 %v3323_v50 }
 0x18d   :  { %2498 = vmatpush1.bf16.msra.mxu0 %v3177_v37  ;;  %2529 = vmatpush3.bf16.msra.mxu1 %v3194_v57 }
 0x18e   :  { %2500 = vmatprep.subr.bf16.mxu0 %v3180_v40  ;;  %2530 = vmatprep.subr.bf16.mxu1 %v3037_v0 }
 0x18f   :  { %791 = vmatprep.mubr.f32.mxu0 %v3038_v1  ;;  %2149 = vmatprep.mubr.msk.f32.mxu1 %vm3039_vm0, %v3038_v1 }
 0x191   :  { %2502 = vmatpush1.bf16.msra.mxu0 %v3184_v46  ;;  %2532 = vmatpush3.bf16.msra.mxu1 %v3204_v4 }
 0x192   :  { %2504 = vmatprep.subr.bf16.mxu0 %v3187_v49  ;;  %2533 = vmatprep.subr.bf16.mxu1 %v3037_v0 }
 0x195   :  { %2506 = vmatpush1.bf16.msra.mxu0 %v3192_v55  ;;  %2535 = vmatpush3.bf16.msra.mxu1 %v3216_v13 }
 0x196   :  { %2508 = vmatprep.subr.bf16.mxu0 %v3197_v58  ;;  %2536 = vmatprep.subr.bf16.mxu1 %v3037_v0 }
 0x199   :  { %2510 = vmatpush1.bf16.msra.mxu0 %v3201_v2  ;;  %2538 = vmatpush3.bf16.msra.mxu1 %v3226_v22 }
 0x19a   :  { %2512 = vmatprep.subr.bf16.mxu0 %v3207_v5  ;;  %2539 = vmatprep.subr.bf16.mxu1 %v3037_v0 }
 0x19d   :  { %2514 = vmatpush1.bf16.msra.mxu0 %v3213_v11  ;;  %2541 = vmatpush3.bf16.msra.mxu1 %v3236_v32 }
 0x19e   :  { %2516 = vmatprep.subr.bf16.mxu0 %v3219_v14  ;;  %2542 = vmatprep.subr.bf16.mxu1 %v3037_v0 }
 0x1a1   :  { %2518 = vmatpush1.bf16.msra.mxu0 %v3223_v20  ;;  %2544 = vmatpush3.bf16.msra.mxu1 %v3246_v39 }
 0x1a2   :  { %2520 = vmatprep.subr.bf16.mxu0 %v3229_v23  ;;  %2545 = vmatprep.subr.bf16.mxu1 %v3037_v0 }
 0x1a5   :  { %2522 = vmatpush1.bf16.msra.mxu0 %v3233_v29  ;;  %2547 = vmatpush3.bf16.msra.mxu1 %v3257_v44 }
 0x1a6   :  { %2524 = vmatprep.subr.bf16.mxu0 %v3239_v33  ;;  %2548 = vmatprep.subr.bf16.mxu1 %v3037_v0 }
 0x1a9   :  { %2526 = vmatpush1.bf16.msra.mxu0 %v3243_v38  ;;  %2550 = vmatpush3.bf16.msra.mxu1 %v3263_v48 }
 0x1aa   :  { %2552 = vmatprep.subr.bf16.mxu0 %v3173_v30  ;;  %2583 = vmatprep.subr.bf16.mxu1 %v3037_v0 }
 0x25f   :  { %v613_v43 = vpop.f32.mrb[4].mxu0  ;;  %v684_v51 = vpop.f32.mrb[4].mxu1 }
 0x260   :  { %v689_v52 = vrot.slane %v613_v43, 7  ;;  %v615_v53 = vpop.f32.mrb[5].mxu0  ;;  %v2116_v54 = vpop.f32.mrb[5].mxu1  ;;  %v708_v7 = vadd.f32 %v684_v51, %v3316_v24 }
 0x261   :  { %v699_v60 = vrot.slane %v615_v53, 7 }
 0x262   :  { %v691_v56 = vadd.f32 %v689_v52, %v3307_v62  ;;  %v710_v8 = vrot.slane %v708_v7, 7 }
 0x263   :  { %v701_v61 = vadd.f32 %v699_v60, %v3310_v10 }
 0x264   :  { %v1845_v59 = vmul.f32 -1.442695, %v691_v56 }
 0x265   :  { %v1846_v6 = vmul.f32 -1.442695, %v701_v61 }
 0x266   :  { %2853 = vpow2.f32 %v1845_v59 }
 0x270   :  { %v2854_v63 = vpop.eup %2853 }
 0x271   :  { %v695_v3 = vadd.f32 1.0, %v2854_v63 }
 0x273   :  { %2855 = vrcp.f32 %v695_v3 }
 0x274   :  { %2857 = vpow2.f32 %v1846_v6 }
 0x27d   :  { %v2856_v9 = vpop.eup %2855 }
 0x27e   :  { %v712_v12 = vmul.f32 %v2856_v9, %v710_v8  ;;  %v2858_v16 = vpop.eup %2857 }
 0x27f   :  { %v705_v17 = vadd.f32 1.0, %v2858_v16 }
 0x280   :  { %v713_v15 = vadd.f32 %v712_v12, %v3319_v31 }
 0x282   :  { %2859 = vtanh.f32 %v713_v15 }
 0x283   :  { %2861 = vrcp.f32 %v705_v17 }
 0x28c   :  { %v2860_v18 = vpop.eup %2859 }
 0x28d   :  { %v716_v19 = vrot.slane %v2860_v18, 1  ;;  %v2862_v26 = vpop.eup %2861 }
 0x28f   :  { %v718_v21 = vsub.f32 %v3323_v50, %v716_v19 }
 0x291   :  { %v720_v25 = vrot.slane %v718_v21, 7 }
 0x293   :  { %v722_v27 = vmul.f32 %v2862_v26, %v720_v25 }
 0x295   :  { %v3367_v28 = vadd.f32 %v2860_v18, %v722_v27 }
 0x297   :  { %v725_v34 = vrot.slane %v3367_v28, 1 }
 0x299   :  { %792 = vmatmul.mubr.f32.vlgmr.msra.gmra.mrb[6].mxu0 %v725_v34  ;;  %2150 = vmatmul.mubr.f32.vlgmr.msra.gmra.mrb[6].mxu1 %v725_v34 }
 0x29a   :  { %2554 = vmatpush1.bf16.msra.mxu0 %v3177_v37  ;;  %2585 = vmatpush3.bf16.msra.mxu1 %v3194_v57 }
 0x29b   :  { %2556 = vmatprep.subr.bf16.mxu0 %v3180_v40  ;;  %2586 = vmatprep.subr.bf16.mxu1 %v3037_v0 }
 0x29c   :  { %971 = vmatprep.mubr.f32.mxu0 %v3038_v1  ;;  %2184 = vmatprep.mubr.msk.f32.mxu1 %vm3039_vm0, %v3038_v1 }
 0x29e   :  { %2558 = vmatpush1.bf16.msra.mxu0 %v3184_v46  ;;  %2588 = vmatpush3.bf16.msra.mxu1 %v3204_v4 }
 0x29f   :  { %2560 = vmatprep.subr.bf16.mxu0 %v3187_v49  ;;  %2589 = vmatprep.subr.bf16.mxu1 %v3037_v0 }
 0x2a2   :  { %2562 = vmatpush1.bf16.msra.mxu0 %v3192_v55  ;;  %2591 = vmatpush3.bf16.msra.mxu1 %v3216_v13 }
 0x2a3   :  { %2564 = vmatprep.subr.bf16.mxu0 %v3197_v58  ;;  %2592 = vmatprep.subr.bf16.mxu1 %v3037_v0 }
 0x2a6   :  { %2566 = vmatpush1.bf16.msra.mxu0 %v3201_v2  ;;  %2594 = vmatpush3.bf16.msra.mxu1 %v3226_v22 }
 0x2a7   :  { %2568 = vmatprep.subr.bf16.mxu0 %v3207_v5  ;;  %2595 = vmatprep.subr.bf16.mxu1 %v3037_v0 }
 0x2aa   :  { %2570 = vmatpush1.bf16.msra.mxu0 %v3213_v11  ;;  %2597 = vmatpush3.bf16.msra.mxu1 %v3236_v32 }
 0x2ab   :  { %2572 = vmatprep.subr.bf16.mxu0 %v3219_v14  ;;  %2598 = vmatprep.subr.bf16.mxu1 %v3037_v0 }
 0x2ae   :  { %2574 = vmatpush1.bf16.msra.mxu0 %v3223_v20  ;;  %2600 = vmatpush3.bf16.msra.mxu1 %v3246_v39 }
 0x2af   :  { %2576 = vmatprep.subr.bf16.mxu0 %v3229_v23  ;;  %2601 = vmatprep.subr.bf16.mxu1 %v3037_v0 }
 0x2b2   :  { %2578 = vmatpush1.bf16.msra.mxu0 %v3233_v29  ;;  %2603 = vmatpush3.bf16.msra.mxu1 %v3257_v44 }
 0x2b3   :  { %2580 = vmatprep.subr.bf16.mxu0 %v3239_v33  ;;  %2604 = vmatprep.subr.bf16.mxu1 %v3037_v0 }
 0x2b6   :  { %2582 = vmatpush1.bf16.msra.mxu0 %v3243_v38  ;;  %2606 = vmatpush3.bf16.msra.mxu1 %v3263_v48 }
 0x2b7   :  { %2608 = vmatprep.subr.bf16.mxu0 %v3173_v30  ;;  %2639 = vmatprep.subr.bf16.mxu1 %v3037_v0 }
 0x36c   :  { %v793_v35 = vpop.f32.mrb[6].mxu0  ;;  %v864_v36 = vpop.f32.mrb[6].mxu1 }
 0x36d   :  { %v869_v41 = vrot.slane %v793_v35, 6  ;;  %v795_v42 = vpop.f32.mrb[7].mxu0  ;;  %v2151_v45 = vpop.f32.mrb[7].mxu1  ;;  %v888_v59 = vadd.f32 %v864_v36, %v3316_v24 }
 0x36e   :  { %v879_v51 = vrot.slane %v795_v42, 6 }
 0x36f   :  { %v871_v47 = vadd.f32 %v869_v41, %v3307_v62  ;;  %v890_v60 = vrot.slane %v888_v59, 6 }
 0x370   :  { %v881_v52 = vadd.f32 %v879_v51, %v3310_v10 }
 0x371   :  { %v1847_v43 = vmul.f32 -1.442695, %v871_v47 }
 0x372   :  { %v1848_v56 = vmul.f32 -1.442695, %v881_v52 }
 0x373   :  { %2863 = vpow2.f32 %v1847_v43 }
 0x37d   :  { %v2864_v53 = vpop.eup %2863 }
 0x37e   :  { %v875_v54 = vadd.f32 1.0, %v2864_v53 }
 0x380   :  { %2865 = vrcp.f32 %v875_v54 }
 0x381   :  { %2867 = vpow2.f32 %v1848_v56 }
 0x38a   :  { %v2866_v61 = vpop.eup %2865 }
 0x38b   :  { %v892_v63 = vmul.f32 %v2866_v61, %v890_v60  ;;  %v2868_v6 = vpop.eup %2867 }
 0x38c   :  { %v885_v7 = vadd.f32 1.0, %v2868_v6 }
 0x38d   :  { %v893_v3 = vadd.f32 %v892_v63, %v3319_v31 }
 0x38f   :  { %2869 = vtanh.f32 %v893_v3 }
 0x390   :  { %2871 = vrcp.f32 %v885_v7 }
 0x399   :  { %v2870_v8 = vpop.eup %2869 }
 0x39a   :  { %v896_v9 = vrot.slane %v2870_v8, 1  ;;  %v2872_v16 = vpop.eup %2871 }
 0x39c   :  { %v898_v12 = vsub.f32 %v3367_v28, %v896_v9 }
 0x39e   :  { %v900_v15 = vrot.slane %v898_v12, 7 }
 0x3a0   :  { %v902_v17 = vmul.f32 %v2872_v16, %v900_v15 }
 0x3a2   :  { %v3410_v18 = vadd.f32 %v2870_v8, %v902_v17 }
 0x3a4   :  { %v905_v19 = vrot.slane %v3410_v18, 2 }
 0x3a6   :  { %972 = vmatmul.mubr.f32.vlgmr.msra.gmra.mrb[8].mxu0 %v905_v19  ;;  %2185 = vmatmul.mubr.f32.vlgmr.msra.gmra.mrb[8].mxu1 %v905_v19 }
 0x3a7   :  { %2610 = vmatpush1.bf16.msra.mxu0 %v3177_v37  ;;  %2641 = vmatpush3.bf16.msra.mxu1 %v3194_v57 }
 0x3a8   :  { %2612 = vmatprep.subr.bf16.mxu0 %v3180_v40  ;;  %2642 = vmatprep.subr.bf16.mxu1 %v3037_v0 }
 0x3a9   :  { %1151 = vmatprep.mubr.f32.mxu0 %v3038_v1  ;;  %2219 = vmatprep.mubr.msk.f32.mxu1 %vm3039_vm0, %v3038_v1 }
 0x3ab   :  { %2614 = vmatpush1.bf16.msra.mxu0 %v3184_v46  ;;  %2644 = vmatpush3.bf16.msra.mxu1 %v3204_v4 }
 0x3ac   :  { %2616 = vmatprep.subr.bf16.mxu0 %v3187_v49  ;;  %2645 = vmatprep.subr.bf16.mxu1 %v3037_v0 }
 0x3af   :  { %2618 = vmatpush1.bf16.msra.mxu0 %v3192_v55  ;;  %2647 = vmatpush3.bf16.msra.mxu1 %v3216_v13 }
 0x3b0   :  { %2620 = vmatprep.subr.bf16.mxu0 %v3197_v58  ;;  %2648 = vmatprep.subr.bf16.mxu1 %v3037_v0 }
 0x3b3   :  { %2622 = vmatpush1.bf16.msra.mxu0 %v3201_v2  ;;  %2650 = vmatpush3.bf16.msra.mxu1 %v3226_v22 }
 0x3b4   :  { %2624 = vmatprep.subr.bf16.mxu0 %v3207_v5  ;;  %2651 = vmatprep.subr.bf16.mxu1 %v3037_v0 }
 0x3b7   :  { %2626 = vmatpush1.bf16.msra.mxu0 %v3213_v11  ;;  %2653 = vmatpush3.bf16.msra.mxu1 %v3236_v32 }
 0x3b8   :  { %2628 = vmatprep.subr.bf16.mxu0 %v3219_v14  ;;  %2654 = vmatprep.subr.bf16.mxu1 %v3037_v0 }
 0x3bb   :  { %2630 = vmatpush1.bf16.msra.mxu0 %v3223_v20  ;;  %2656 = vmatpush3.bf16.msra.mxu1 %v3246_v39 }
 0x3bc   :  { %2632 = vmatprep.subr.bf16.mxu0 %v3229_v23  ;;  %2657 = vmatprep.subr.bf16.mxu1 %v3037_v0 }
 0x3bf   :  { %2634 = vmatpush1.bf16.msra.mxu0 %v3233_v29  ;;  %2659 = vmatpush3.bf16.msra.mxu1 %v3257_v44 }
 0x3c0   :  { %2636 = vmatprep.subr.bf16.mxu0 %v3239_v33  ;;  %2660 = vmatprep.subr.bf16.mxu1 %v3037_v0 }
 0x3c3   :  { %2638 = vmatpush1.bf16.msra.mxu0 %v3243_v38  ;;  %2662 = vmatpush3.bf16.msra.mxu1 %v3263_v48 }
 0x3c4   :  { %2664 = vmatprep.subr.bf16.mxu0 %v3173_v30  ;;  %2695 = vmatprep.subr.bf16.mxu1 %v3037_v0 }
 0x479   :  { %v973_v21 = vpop.f32.mrb[8].mxu0  ;;  %v1044_v25 = vpop.f32.mrb[8].mxu1 }
 0x47a   :  { %v1049_v26 = vrot.slane %v973_v21, 5  ;;  %v975_v27 = vpop.f32.mrb[9].mxu0  ;;  %v2186_v34 = vpop.f32.mrb[9].mxu1  ;;  %v1068_v51 = vadd.f32 %v1044_v25, %v3316_v24 }
 0x47b   :  { %v1059_v41 = vrot.slane %v975_v27, 5 }
 0x47c   :  { %v1051_v35 = vadd.f32 %v1049_v26, %v3307_v62  ;;  %v1070_v52 = vrot.slane %v1068_v51, 5 }
 0x47d   :  { %v1061_v42 = vadd.f32 %v1059_v41, %v3310_v10 }
 0x47e   :  { %v1849_v36 = vmul.f32 -1.442695, %v1051_v35 }
 0x47f   :  { %v1850_v43 = vmul.f32 -1.442695, %v1061_v42 }
 0x480   :  { %2873 = vpow2.f32 %v1849_v36 }
 0x48a   :  { %v2874_v45 = vpop.eup %2873 }
 0x48b   :  { %v1055_v47 = vadd.f32 1.0, %v2874_v45 }
 0x48d   :  { %2875 = vrcp.f32 %v1055_v47 }
 0x48e   :  { %2877 = vpow2.f32 %v1850_v43 }
 0x497   :  { %v2876_v53 = vpop.eup %2875 }
 0x498   :  { %v1072_v54 = vmul.f32 %v2876_v53, %v1070_v52  ;;  %v2878_v59 = vpop.eup %2877 }
 0x499   :  { %v1065_v60 = vadd.f32 1.0, %v2878_v59 }
 0x49a   :  { %v1073_v56 = vadd.f32 %v1072_v54, %v3319_v31 }
 0x49c   :  { %2879 = vtanh.f32 %v1073_v56 }
 0x49d   :  { %2881 = vrcp.f32 %v1065_v60 }
 0x4a6   :  { %v2880_v61 = vpop.eup %2879 }
 0x4a7   :  { %v1076_v63 = vrot.slane %v2880_v61, 1  ;;  %v2882_v7 = vpop.eup %2881 }
 0x4a9   :  { %v1078_v3 = vsub.f32 %v3410_v18, %v1076_v63 }
 0x4ab   :  { %v1080_v6 = vrot.slane %v1078_v3, 7 }
 0x4ad   :  { %v1082_v8 = vmul.f32 %v2882_v7, %v1080_v6 }
 0x4af   :  { %v3453_v9 = vadd.f32 %v2880_v61, %v1082_v8 }
 0x4b1   :  { %v1085_v12 = vrot.slane %v3453_v9, 3 }
 0x4b3   :  { %1152 = vmatmul.mubr.f32.vlgmr.msra.gmra.mrb[10].mxu0 %v1085_v12  ;;  %2220 = vmatmul.mubr.f32.vlgmr.msra.gmra.mrb[10].mxu1 %v1085_v12 }
 0x4b4   :  { %2666 = vmatpush1.bf16.msra.mxu0 %v3177_v37  ;;  %2697 = vmatpush3.bf16.msra.mxu1 %v3194_v57 }
 0x4b5   :  { %2668 = vmatprep.subr.bf16.mxu0 %v3180_v40  ;;  %2698 = vmatprep.subr.bf16.mxu1 %v3037_v0 }
 0x4b6   :  { %1331 = vmatprep.mubr.f32.mxu0 %v3038_v1  ;;  %2254 = vmatprep.mubr.msk.f32.mxu1 %vm3039_vm0, %v3038_v1 }
 0x4b8   :  { %2670 = vmatpush1.bf16.msra.mxu0 %v3184_v46  ;;  %2700 = vmatpush3.bf16.msra.mxu1 %v3204_v4 }
 0x4b9   :  { %2672 = vmatprep.subr.bf16.mxu0 %v3187_v49  ;;  %2701 = vmatprep.subr.bf16.mxu1 %v3037_v0 }
 0x4bc   :  { %2674 = vmatpush1.bf16.msra.mxu0 %v3192_v55  ;;  %2703 = vmatpush3.bf16.msra.mxu1 %v3216_v13 }
 0x4bd   :  { %2676 = vmatprep.subr.bf16.mxu0 %v3197_v58  ;;  %2704 = vmatprep.subr.bf16.mxu1 %v3037_v0 }
 0x4c0   :  { %2678 = vmatpush1.bf16.msra.mxu0 %v3201_v2  ;;  %2706 = vmatpush3.bf16.msra.mxu1 %v3226_v22 }
 0x4c1   :  { %2680 = vmatprep.subr.bf16.mxu0 %v3207_v5  ;;  %2707 = vmatprep.subr.bf16.mxu1 %v3037_v0 }
 0x4c4   :  { %2682 = vmatpush1.bf16.msra.mxu0 %v3213_v11  ;;  %2709 = vmatpush3.bf16.msra.mxu1 %v3236_v32 }
 0x4c5   :  { %2684 = vmatprep.subr.bf16.mxu0 %v3219_v14  ;;  %2710 = vmatprep.subr.bf16.mxu1 %v3037_v0 }
 0x4c8   :  { %2686 = vmatpush1.bf16.msra.mxu0 %v3223_v20  ;;  %2712 = vmatpush3.bf16.msra.mxu1 %v3246_v39 }
 0x4c9   :  { %2688 = vmatprep.subr.bf16.mxu0 %v3229_v23  ;;  %2713 = vmatprep.subr.bf16.mxu1 %v3037_v0 }
 0x4cc   :  { %2690 = vmatpush1.bf16.msra.mxu0 %v3233_v29  ;;  %2715 = vmatpush3.bf16.msra.mxu1 %v3257_v44 }
 0x4cd   :  { %2692 = vmatprep.subr.bf16.mxu0 %v3239_v33  ;;  %2716 = vmatprep.subr.bf16.mxu1 %v3037_v0 }
 0x4d0   :  { %2694 = vmatpush1.bf16.msra.mxu0 %v3243_v38  ;;  %2718 = vmatpush3.bf16.msra.mxu1 %v3263_v48 }
 0x4d1   :  { %2720 = vmatprep.subr.bf16.mxu0 %v3173_v30  ;;  %2751 = vmatprep.subr.bf16.mxu1 %v3037_v0 }
 0x586   :  { %v1153_v15 = vpop.f32.mrb[10].mxu0  ;;  %v1224_v16 = vpop.f32.mrb[10].mxu1 }
 0x587   :  { %v1229_v17 = vrot.slane %v1153_v15, 4  ;;  %v1155_v19 = vpop.f32.mrb[11].mxu0  ;;  %v2221_v21 = vpop.f32.mrb[11].mxu1  ;;  %v1248_v42 = vadd.f32 %v1224_v16, %v3316_v24 }
 0x588   :  { %v1239_v27 = vrot.slane %v1155_v19, 4 }
 0x589   :  { %v1231_v25 = vadd.f32 %v1229_v17, %v3307_v62  ;;  %v1250_v45 = vrot.slane %v1248_v42, 4 }
 0x58a   :  { %v1241_v34 = vadd.f32 %v1239_v27, %v3310_v10 }
 0x58b   :  { %v1851_v26 = vmul.f32 -1.442695, %v1231_v25 }
 0x58c   :  { %v1852_v41 = vmul.f32 -1.442695, %v1241_v34 }
 0x58d   :  { %2883 = vpow2.f32 %v1851_v26 }
 0x597   :  { %v2884_v35 = vpop.eup %2883 }
 0x598   :  { %v1235_v36 = vadd.f32 1.0, %v2884_v35 }
 0x59a   :  { %2885 = vrcp.f32 %v1235_v36 }
 0x59b   :  { %2887 = vpow2.f32 %v1852_v41 }
 0x5a4   :  { %v2886_v47 = vpop.eup %2885 }
 0x5a5   :  { %v1252_v43 = vmul.f32 %v2886_v47, %v1250_v45  ;;  %v2888_v52 = vpop.eup %2887 }
 0x5a6   :  { %v1245_v53 = vadd.f32 1.0, %v2888_v52 }
 0x5a7   :  { %v1253_v51 = vadd.f32 %v1252_v43, %v3319_v31 }
 0x5a9   :  { %2889 = vtanh.f32 %v1253_v51 }
 0x5aa   :  { %2891 = vrcp.f32 %v1245_v53 }
 0x5b3   :  { %v2890_v54 = vpop.eup %2889 }
 0x5b4   :  { %v1256_v56 = vrot.slane %v2890_v54, 1  ;;  %v2892_v61 = vpop.eup %2891 }
 0x5b6   :  { %v1258_v59 = vsub.f32 %v3453_v9, %v1256_v56 }
 0x5b8   :  { %v1260_v60 = vrot.slane %v1258_v59, 7 }
 0x5ba   :  { %v1262_v63 = vmul.f32 %v2892_v61, %v1260_v60 }
 0x5bc   :  { %v3496_v3 = vadd.f32 %v2890_v54, %v1262_v63 }
 0x5be   :  { %v1265_v6 = vrot.slane %v3496_v3, 4 }
 0x5c0   :  { %1332 = vmatmul.mubr.f32.vlgmr.msra.gmra.mrb[12].mxu0 %v1265_v6  ;;  %2255 = vmatmul.mubr.f32.vlgmr.msra.gmra.mrb[12].mxu1 %v1265_v6 }
 0x5c1   :  { %2722 = vmatpush1.bf16.msra.mxu0 %v3177_v37  ;;  %2753 = vmatpush3.bf16.msra.mxu1 %v3194_v57 }
 0x5c2   :  { %2724 = vmatprep.subr.bf16.mxu0 %v3180_v40  ;;  %2754 = vmatprep.subr.bf16.mxu1 %v3037_v0 }
 0x5c3   :  { %1511 = vmatprep.mubr.f32.mxu0 %v3038_v1  ;;  %2289 = vmatprep.mubr.msk.f32.mxu1 %vm3039_vm0, %v3038_v1 }
 0x5c5   :  { %2726 = vmatpush1.bf16.msra.mxu0 %v3184_v46  ;;  %2756 = vmatpush3.bf16.msra.mxu1 %v3204_v4 }
 0x5c6   :  { %2728 = vmatprep.subr.bf16.mxu0 %v3187_v49  ;;  %2757 = vmatprep.subr.bf16.mxu1 %v3037_v0 }
 0x5c9   :  { %2730 = vmatpush1.bf16.msra.mxu0 %v3192_v55  ;;  %2759 = vmatpush3.bf16.msra.mxu1 %v3216_v13 }
 0x5ca   :  { %2732 = vmatprep.subr.bf16.mxu0 %v3197_v58  ;;  %2760 = vmatprep.subr.bf16.mxu1 %v3037_v0 }
 0x5cd   :  { %2734 = vmatpush1.bf16.msra.mxu0 %v3201_v2  ;;  %2762 = vmatpush3.bf16.msra.mxu1 %v3226_v22 }
 0x5ce   :  { %2736 = vmatprep.subr.bf16.mxu0 %v3207_v5  ;;  %2763 = vmatprep.subr.bf16.mxu1 %v3037_v0 }
 0x5d1   :  { %2738 = vmatpush1.bf16.msra.mxu0 %v3213_v11  ;;  %2765 = vmatpush3.bf16.msra.mxu1 %v3236_v32 }
 0x5d2   :  { %2740 = vmatprep.subr.bf16.mxu0 %v3219_v14  ;;  %2766 = vmatprep.subr.bf16.mxu1 %v3037_v0 }
 0x5d5   :  { %2742 = vmatpush1.bf16.msra.mxu0 %v3223_v20  ;;  %2768 = vmatpush3.bf16.msra.mxu1 %v3246_v39 }
 0x5d6   :  { %2744 = vmatprep.subr.bf16.mxu0 %v3229_v23  ;;  %2769 = vmatprep.subr.bf16.mxu1 %v3037_v0 }
 0x5d9   :  { %2746 = vmatpush1.bf16.msra.mxu0 %v3233_v29  ;;  %2771 = vmatpush3.bf16.msra.mxu1 %v3257_v44 }
 0x5da   :  { %2748 = vmatprep.subr.bf16.mxu0 %v3239_v33  ;;  %2772 = vmatprep.subr.bf16.mxu1 %v3037_v0 }
 0x5dd   :  { %2750 = vmatpush1.bf16.msra.mxu0 %v3243_v38  ;;  %2774 = vmatpush3.bf16.msra.mxu1 %v3263_v48 }
 0x5de   :  { %2776 = vmatprep.subr.bf16.mxu0 %v3173_v30  ;;  %2807 = vmatprep.subr.bf16.mxu1 %v3037_v0 }
 0x693   :  { %v1333_v7 = vpop.f32.mrb[12].mxu0  ;;  %v1404_v8 = vpop.f32.mrb[12].mxu1 }
 0x694   :  { %v1409_v12 = vrot.slane %v1333_v7, 3  ;;  %v1335_v15 = vpop.f32.mrb[13].mxu0  ;;  %v2256_v16 = vpop.f32.mrb[13].mxu1  ;;  %v1428_v30 = vadd.f32 %v1404_v8, %v3316_v24 }
 0x695   :  { %v1419_v21 = vrot.slane %v1335_v15, 3 }
 0x696   :  { %v1411_v17 = vadd.f32 %v1409_v12, %v3307_v62  ;;  %v1430_v35 = vrot.slane %v1428_v30, 3 }
 0x697   :  { %v1421_v25 = vadd.f32 %v1419_v21, %v3310_v10 }
 0x698   :  { %v1853_v19 = vmul.f32 -1.442695, %v1411_v17 }
 0x699   :  { %v1854_v34 = vmul.f32 -1.442695, %v1421_v25 }
 0x69a   :  { %2893 = vpow2.f32 %v1853_v19 }
 0x6a4   :  { %v2894_v26 = vpop.eup %2893 }
 0x6a5   :  { %v1415_v27 = vadd.f32 1.0, %v2894_v26 }
 0x6a7   :  { %2895 = vrcp.f32 %v1415_v27 }
 0x6a8   :  { %2897 = vpow2.f32 %v1854_v34 }
 0x6b1   :  { %v2896_v36 = vpop.eup %2895 }
 0x6b2   :  { %v1432_v41 = vmul.f32 %v2896_v36, %v1430_v35  ;;  %v2898_v45 = vpop.eup %2897 }
 0x6b3   :  { %v1425_v47 = vadd.f32 1.0, %v2898_v45 }
 0x6b4   :  { %v1433_v42 = vadd.f32 %v1432_v41, %v3319_v31 }
 0x6b6   :  { %2899 = vtanh.f32 %v1433_v42 }
 0x6b7   :  { %2901 = vrcp.f32 %v1425_v47 }
 0x6c0   :  { %v2900_v43 = vpop.eup %2899 }
 0x6c1   :  { %v1436_v51 = vrot.slane %v2900_v43, 1  ;;  %v2902_v54 = vpop.eup %2901 }
 0x6c3   :  { %v1438_v52 = vsub.f32 %v3496_v3, %v1436_v51  ;;  %v1804_v51 = vsel %vm115_vm1, %v3323_v50, %v3367_v28 }
 0x6c5   :  { %v1440_v53 = vrot.slane %v1438_v52, 7 }
 0x6c7   :  { %v1442_v56 = vmul.f32 %v2902_v54, %v1440_v53 }
 0x6c9   :  { %v3539_v59 = vadd.f32 %v2900_v43, %v1442_v56 }
 0x6cb   :  { %v1445_v60 = vrot.slane %v3539_v59, 5 }
 0x6cd   :  { %1512 = vmatmul.mubr.f32.vlgmr.msra.gmra.mrb[14].mxu0 %v1445_v60  ;;  %2290 = vmatmul.mubr.f32.vlgmr.msra.gmra.mrb[14].mxu1 %v1445_v60 }
 0x6ce   :  { %2778 = vmatpush1.bf16.msra.mxu0 %v3177_v37  ;;  %2809 = vmatpush3.bf16.msra.mxu1 %v3194_v57 }
 0x6cf   :  { %2780 = vmatprep.subr.bf16.mxu0 %v3180_v40  ;;  %2810 = vmatprep.subr.bf16.mxu1 %v3037_v0 }
 0x6d0   :  { %1691 = vmatprep.mubr.f32.mxu0 %v3038_v1  ;;  %2324 = vmatprep.mubr.msk.f32.mxu1 %vm3039_vm0, %v3038_v1 }
 0x6d2   :  { %2782 = vmatpush1.bf16.msra.mxu0 %v3184_v46  ;;  %2812 = vmatpush3.bf16.msra.mxu1 %v3204_v4 }
 0x6d3   :  { %2784 = vmatprep.subr.bf16.mxu0 %v3187_v49  ;;  %2813 = vmatprep.subr.bf16.mxu1 %v3037_v0 }
 0x6d6   :  { %2786 = vmatpush1.bf16.msra.mxu0 %v3192_v55  ;;  %2815 = vmatpush3.bf16.msra.mxu1 %v3216_v13 }
 0x6d7   :  { %2788 = vmatprep.subr.bf16.mxu0 %v3197_v58  ;;  %2816 = vmatprep.subr.bf16.mxu1 %v3037_v0 }
 0x6da   :  { %2790 = vmatpush1.bf16.msra.mxu0 %v3201_v2  ;;  %2818 = vmatpush3.bf16.msra.mxu1 %v3226_v22 }
 0x6db   :  { %2792 = vmatprep.subr.bf16.mxu0 %v3207_v5  ;;  %2819 = vmatprep.subr.bf16.mxu1 %v3037_v0 }
 0x6de   :  { %2794 = vmatpush1.bf16.msra.mxu0 %v3213_v11  ;;  %2821 = vmatpush3.bf16.msra.mxu1 %v3236_v32 }
 0x6df   :  { %2796 = vmatprep.subr.bf16.mxu0 %v3219_v14  ;;  %2822 = vmatprep.subr.bf16.mxu1 %v3037_v0 }
 0x6e2   :  { %2798 = vmatpush1.bf16.msra.mxu0 %v3223_v20  ;;  %2824 = vmatpush3.bf16.msra.mxu1 %v3246_v39 }
 0x6e3   :  { %2800 = vmatprep.subr.bf16.mxu0 %v3229_v23  ;;  %2825 = vmatprep.subr.bf16.mxu1 %v3037_v0 }
 0x6e6   :  { %2802 = vmatpush1.bf16.msra.mxu0 %v3233_v29  ;;  %2827 = vmatpush3.bf16.msra.mxu1 %v3257_v44 }
 0x6e7   :  { %2804 = vmatprep.subr.bf16.mxu0 %v3239_v33  ;;  %2828 = vmatprep.subr.bf16.mxu1 %v3037_v0 }
 0x6ea   :  { %2806 = vmatpush1.bf16.msra.mxu0 %v3243_v38  ;;  %2830 = vmatpush3.bf16.msra.mxu1 %v3263_v48 }
 0x7a0   :  { %v1513_v1 = vpop.f32.mrb[14].mxu0  ;;  %v1584_v37 = vpop.f32.mrb[14].mxu1 }
 0x7a1   :  { %v1589_v40 = vrot.slane %v1513_v1, 2  ;;  %v1515_v46 = vpop.f32.mrb[15].mxu0  ;;  %v2291_v49 = vpop.f32.mrb[15].mxu1  ;;  %v1608_v11 = vadd.f32 %v1584_v37, %v3316_v24 }
 0x7a2   :  { %v1599_v58 = vrot.slane %v1515_v46, 2 }
 0x7a3   :  { %v1591_v55 = vadd.f32 %v1589_v40, %v3307_v62  ;;  %v1610_v13 = vrot.slane %v1608_v11, 2 }
 0x7a4   :  { %v1601_v2 = vadd.f32 %v1599_v58, %v3310_v10 }
 0x7a5   :  { %v1855_v57 = vmul.f32 -1.442695, %v1591_v55 }
 0x7a6   :  { %v1856_v0 = vmul.f32 -1.442695, %v1601_v2 }
 0x7a7   :  { %2903 = vpow2.f32 %v1855_v57 }
 0x7b1   :  { %v2904_v4 = vpop.eup %2903 }
 0x7b2   :  { %v1595_v5 = vadd.f32 1.0, %v2904_v4 }
 0x7b4   :  { %2905 = vrcp.f32 %v1595_v5 }
 0x7b5   :  { %2907 = vpow2.f32 %v1856_v0 }
 0x7be   :  { %v2906_v14 = vpop.eup %2905 }
 0x7bf   :  { %v1612_v20 = vmul.f32 %v2906_v14, %v1610_v13  ;;  %v2908_v23 = vpop.eup %2907 }
 0x7c0   :  { %v1605_v29 = vadd.f32 1.0, %v2908_v23 }
 0x7c1   :  { %v1613_v22 = vadd.f32 %v1612_v20, %v3319_v31 }
 0x7c3   :  { %2909 = vtanh.f32 %v1613_v22 }
 0x7c4   :  { %2911 = vrcp.f32 %v1605_v29 }
 0x7cd   :  { %v2910_v32 = vpop.eup %2909 }
 0x7ce   :  { %v1616_v33 = vrot.slane %v2910_v32, 1  ;;  %v2912_v44 = vpop.eup %2911 }
 0x7d0   :  { %v1618_v38 = vsub.f32 %v3539_v59, %v1616_v33 }
 0x7d2   :  { %v1620_v39 = vrot.slane %v1618_v38, 7 }
 0x7d4   :  { %v1622_v48 = vmul.f32 %v2912_v44, %v1620_v39 }
 0x7d6   :  { %v1623_v61 = vadd.f32 %v2910_v32, %v1622_v48 }
 0x7d8   :  { %v1625_v63 = vrot.slane %v1623_v61, 6 }
 0x7da   :  { %1692 = vmatmul.mubr.f32.vlgmr.msra.gmra.mrb[16].mxu0 %v1625_v63  ;;  %2325 = vmatmul.mubr.f32.vlgmr.msra.gmra.mrb[16].mxu1 %v1625_v63 }
 0x8ad   :  { %v1693_v6 = vpop.f32.mrb[16].mxu0  ;;  %v1764_v7 = vpop.f32.mrb[16].mxu1 }
 0x8ae   :  { %v1769_v8 = vrot.slane %v1693_v6, 1  ;;  %v1695_v12 = vpop.f32.mrb[17].mxu0  ;;  %v2326_v15 = vpop.f32.mrb[17].mxu1  ;;  %v1788_v34 = vadd.f32 %v1764_v7, %v3316_v24  ;;  %v1805_v24 = vsel %vm117_vm2, %v1804_v51, %v3410_v18 }
 0x8af   :  { %v1779_v19 = vrot.slane %v1695_v12, 1 }
 0x8b0   :  { %v1771_v16 = vadd.f32 %v1769_v8, %v3307_v62  ;;  %v1790_v30 = vrot.slane %v1788_v34, 1 }
 0x8b1   :  { %v1781_v21 = vadd.f32 %v1779_v19, %v3310_v10 }
 0x8b2   :  { %v1857_v17 = vmul.f32 -1.442695, %v1771_v16 }
 0x8b3   :  { %v1858_v27 = vmul.f32 -1.442695, %v1781_v21 }
 0x8b4   :  { %2913 = vpow2.f32 %v1857_v17 }
 0x8be   :  { %v2914_v25 = vpop.eup %2913 }
 0x8bf   :  { %v1775_v26 = vadd.f32 1.0, %v2914_v25 }
 0x8c1   :  { %2915 = vrcp.f32 %v1775_v26 }
 0x8c2   :  { %2917 = vpow2.f32 %v1858_v27 }
 0x8cb   :  { %v2916_v35 = vpop.eup %2915 }
 0x8cc   :  { %v1792_v36 = vmul.f32 %v2916_v35, %v1790_v30  ;;  %v2918_v42 = vpop.eup %2917 }
 0x8cd   :  { %v1785_v62 = vadd.f32 1.0, %v2918_v42 }
 0x8ce   :  { %v1793_v41 = vadd.f32 %v1792_v36, %v3319_v31  ;;  %v1806_v31 = vsel %vm119_vm3, %v1805_v24, %v3453_v9 }
 0x8cf   :  { %v1807_v54 = vsel %vm121_vm4, %v1806_v31, %v3496_v3 }
 0x8d0   :  { %2919 = vtanh.f32 %v1793_v41  ;;  %v1808_v60 = vsel %vm123_vm5, %v1807_v54, %v3539_v59 }
 0x8d1   :  { %2921 = vrcp.f32 %v1785_v62  ;;  %v1809_v1 = vsel %vm125_vm6, %v1808_v60, %v1623_v61 }
 0x8da   :  { %v2920_v45 = vpop.eup %2919 }
 0x8db   :  { %v1796_v47 = vrot.slane %v2920_v45, 1  ;;  %v2922_v52 = vpop.eup %2921 }
 0x8dd   :  { %v1798_v43 = vsub.f32 %v1623_v61, %v1796_v47 }
 0x8df   :  { %v1800_v10 = vrot.slane %v1798_v43, 7 }
 0x8e1   :  { %v1802_v53 = vmul.f32 %v2922_v52, %v1800_v10 }
 0x8e3   :  { %v1803_v56 = vadd.f32 %v2920_v45, %v1802_v53 }
 0x8e5   :  { %v1810_v50 = vsel %vm127_vm7, %v1809_v1, %v1803_v56 }
 0x8e6   :  { %1811 = vst [vmem:[#allocation10] sm:$0xff] %v1810_v50 }
 0x8e7   :  { %3010 = shalt.err (!%p3007_p3)
}
 0x8e8   :  { %s3011_s24 = scalar_lea.hbm %s3616_s7, 128 }
 0x8e9   :  { %p3012_p4 = scmp.ne.s32.totalorder %s3616_s7, %s3011_s24  ;;  %p3015_p5 = scmp.lt.u32.totalorder %s3011_s24, %s3616_s7 }
 0x8eb   :  { %p3017_p6 = pnand %p3015_p5, %p3012_p4 }
 0x8ed   :  { %3020 = shalt.err (!%p3017_p6)
}
 0x8ee   :  { %1821 = dma.vmem_to_hbm [thread:$0]  %s1819_s19, 128, %s3616_s7, [#allocation6]  }
 0x8ef   :  { %3027 = dma.done.wait [#allocation6], 128  }
 0x8f0   :  { %3028 = vsyncadd [#allocation6], 4294967168 }
 0x8f1   :  { %1825 = vsyncpa [#allocation5], 1 }
 0x8f2   :  { %1826 = vsyncpa [#allocation8], 1 }
 0x8f3   :  { %1827 = vsyncpa [#allocation6], 1 }

</bundles_post_ra>
